<compile_context>
chip_gen: v7x
topology: tpu7x:2x2x1
jax: 0.10.0
libtpu: 0.0.40
codegen_flags: <defaults>
</compile_context>

<pallas_src>
import functools

import jax
import jax.numpy as jnp
import numpy as np
from jax.experimental import pallas as pl
from jax.experimental.pallas import tpu as pltpu

# ----------------------------- irreps structure -----------------------------
NS = 8                                   # dim of scalar block (8x0e)
NG = 8                                   # number of gate scalars (8x0e)
GATED_DIMS = (3, 3, 3, 3, 5, 5, 5, 5)    # 4x1o (dim 3) + 4x2e (dim 5)
DG = sum(GATED_DIMS)                     # 32
D_IN = NS + NG + DG                      # 48
D_OUT = NS + DG                          # 40


# e3nn Activation wraps each act in normalize2mom: scale so E[act(z)^2] = 1 for
# z ~ N(0,1).  Computed deterministically on host via Gauss-Hermite quadrature.
# (e3nn itself estimates this moment from a fixed random sample, so values agree
# only to ~1e-3/1e-4 relative; this version is the exact moment.)
def _normalize2mom_const(fn):
    nodes, weights = np.polynomial.hermite_e.hermegauss(128)   # probabilists'
    w = weights / np.sqrt(2.0 * np.pi)                         # -> E[.] weights
    second_moment = float(np.sum(w * fn(nodes) ** 2))
    return float(1.0 / np.sqrt(second_moment))


C_SILU = _normalize2mom_const(lambda z: z / (1.0 + np.exp(-z)))
C_SIG = _normalize2mom_const(lambda z: 1.0 / (1.0 + np.exp(-z)))

# Constant one-hot expand matrix for ElementwiseTensorProduct(4x1o+4x2e, 8x0e):
# row k is 1 over the components belonging to gated irrep instance k.
_EXPAND_NP = np.zeros((NG, DG), dtype=np.float32)
_off = 0
for _k, _d in enumerate(GATED_DIMS):
    _EXPAND_NP[_k, _off:_off + _d] = 1.0
    _off += _d


# --------------------------------- kernel -----------------------------------
def _trgate_kernel(x_ref, e_ref, o_ref):
    # x_ref: (TM, 48) row-major block (rows -> sublanes, channels -> lanes).
    # e_ref: (8, 32) constant expand matrix, resident in VMEM across all steps.
    x = x_ref[...].astype(jnp.float32)                  # (TM, 48)

    # One EUP pass for scalars + gates together (channels 0:16).
    sig = jax.nn.sigmoid(x[:, :NS + NG])                # (TM, 16)

    s_act = (x[:, :NS] * sig[:, :NS]) * C_SILU          # silu(x) = x*sigmoid(x)
    g_act = sig[:, NS:NS + NG] * C_SIG                  # (TM, 8)
    gated = x[:, NS + NG:]                              # (TM, 32)

    # ElementwiseTensorProduct(irreps_gated, 8x0e): spread each gate scalar over
    # its irrep's components with one tiny MXU matmul (free under the HBM
    # roofline; replaces the old per-row VALU mask/where chain).
    g_exp = jnp.dot(g_act, e_ref[...].astype(jnp.float32),
                    preferred_element_type=jnp.float32)  # (TM, 32)

    # Output = concat([scalars, gated * gates], -1); two lane-sliced stores.
    o_ref[:, :NS] = s_act.astype(o_ref.dtype)
    o_ref[:, NS:] = (gated * g_exp).astype(o_ref.dtype)


# -------------------------------- wrapper ------------------------------------
def _round_up(x, m):
    return (x + m - 1) // m * m


@functools.partial(jax.jit, static_argnames=("tile_n",))
def trgate(features, tile_n=8192):
    """Row-major API matching the PyTorch module: (N, D_IN) -> (N, D_OUT).

    The kernel consumes the row-major layout directly; no transposes and no
    padding to a tile multiple, so HBM traffic is exactly the 88 f32/row the
    math needs (plus a tiny pad/slice copy only when N % 8 != 0).
    """
    n, d_in = features.shape
    assert d_in == D_IN
    assert tile_n % 8 == 0 and tile_n > 0

    # Sublane alignment only: pad N to a multiple of 8 (usually a no-op).
    n_pad = _round_up(max(n, 8), 8)
    x = features
    if n_pad != n:
        # TODO(synk): the rare unaligned-N path costs one extra pad + slice copy.
        x = jnp.pad(features, ((0, n_pad - n), (0, 0)))

    # Tile: as large as possible (amortize ~0.35 us/step pipeline overhead), but
    # capped at ~half of N (rounded to a sublane multiple) so the "parallel"
    # grid axis always has >= 2 steps for v7x's two TensorCores, and kept at
    # 8192 rows so the double-buffered lane-padded VMEM footprint (~16 MiB at
    # f32) fits every generation's scoped-VMEM budget.  The last block may
    # overhang n_pad; Pallas pads the read and drops out-of-bounds writes.
    tile = min(tile_n, max(_round_up(pl.cdiv(n_pad, 2), 8), 8))
    grid = pl.cdiv(n_pad, tile)

    expand = jnp.asarray(_EXPAND_NP)   # (8, 32) f32, 1 KiB

    out = pl.pallas_call(
        _trgate_kernel,
        out_shape=jax.ShapeDtypeStruct((n_pad, D_OUT), features.dtype),
        grid_spec=pltpu.PrefetchScalarGridSpec(
            num_scalar_prefetch=0,
            grid=(grid,),
            in_specs=[
                pl.BlockSpec((tile, D_IN), lambda i: (i, 0)),
                # Constant block index -> DMA'd once, stays resident in VMEM.
                pl.BlockSpec((NG, DG), lambda i: (0, 0)),
            ],
            out_specs=pl.BlockSpec((tile, D_OUT), lambda i: (i, 0)),
        ),
        compiler_params=pltpu.CompilerParams(
            dimension_semantics=("parallel",),       # megacore-shardable on v7x
            vmem_limit_bytes=32 * 1024 * 1024,       # cover v5e's 16 MiB default
        ),
        cost_estimate=pl.CostEstimate(
            flops=600 * n_pad,                       # ~568 flops/row (incl. 8x32 matmul)
            transcendentals=(NS + NG) * n_pad,       # one sigmoid per scalar+gate
            bytes_accessed=(D_IN + D_OUT) * 4 * n_pad,
        ),
    )(x, expand)

    if n_pad != n:
        out = out[:n]
    return out


# ------------------------------ pure-JAX reference ---------------------------
def trgate_ref(features):
    scalars = features[:, :NS]
    gates = features[:, NS:NS + NG]
    gated = features[:, NS + NG:]
    s_act = jax.nn.silu(scalars) * C_SILU
    g_act = jax.nn.sigmoid(gates) * C_SIG
    g_exp = jnp.repeat(g_act, np.array(GATED_DIMS), axis=-1,
                       total_repeat_length=DG)
    return jnp.concatenate([s_act, gated * g_exp], axis=-1)


if __name__ == "__main__":
    key = jax.random.PRNGKey(0)
    k1, k2 = jax.random.split(key)

    # Aligned case: 2-step parallel grid, evenly dividing tile.
    n1 = 1024
    x1 = jax.random.normal(k1, (n1, D_IN), dtype=jnp.float32)
    out1 = jax.block_until_ready(trgate(x1))
    np.testing.assert_allclose(np.asarray(out1), np.asarray(trgate_ref(x1)),
                               rtol=1e-5, atol=1e-5)
    assert out1.shape == (n1, D_OUT)

    # Ragged case: N multiple of 8 but not of the tile -> partial last block
    # (no tile-multiple padding, no extra HBM passes).
    n2 = 1000
    x2 = jax.random.normal(k2, (n2, D_IN), dtype=jnp.float32)
    out2 = jax.block_until_ready(trgate(x2))
    np.testing.assert_allclose(np.asarray(out2), np.asarray(trgate_ref(x2)),
                               rtol=1e-5, atol=1e-5)
    assert out2.shape == (n2, D_OUT)

    print("KERNEL_OK")
</pallas_src>

<mosaic_0001>
module attributes {stable_mosaic.version = 11 : i64} {
  func.func @_trgate_kernel(%arg0: i32, %arg1: memref<512x48xf32, #tpu.memory_space<vmem>>, %arg2: memref<8x32xf32, #tpu.memory_space<vmem>>, %arg3: memref<512x40xf32, #tpu.memory_space<vmem>>) attributes {dimension_semantics = [#tpu.dimension_semantics<parallel>], iteration_bounds = array<i64: 2>, scalar_prefetch = 0 : i64, scratch_operands = 0 : i64, tpu.core_type = #tpu.core_type<tc>, window_params = [{transform_indices = @transform_0, window_bounds = array<i64: 512, 48>}, {pipeline_mode = #tpu.pipeline_mode<synchronous>, transform_indices = @transform_1, window_bounds = array<i64: 8, 32>}, {transform_indices = @transform_2, window_bounds = array<i64: 512, 40>}]} {
    %c0 = arith.constant 0 : index
    %c0_0 = arith.constant 0 : index
    %0 = vector.load %arg1[%c0, %c0_0] : memref<512x48xf32, #tpu.memory_space<vmem>>, vector<512x48xf32>
    %1 = vector.extract_strided_slice %0 {offsets = [0, 0], sizes = [512, 16], strides = [1, 1]} : vector<512x48xf32> to vector<512x16xf32>
    %2 = arith.negf %1 : vector<512x16xf32>
    %3 = math.exp %2 : vector<512x16xf32>
    %cst = arith.constant 1.000000e+00 : f32
    %4 = vector.broadcast %cst : f32 to vector<512x16xf32>
    %5 = arith.addf %4, %3 : vector<512x16xf32>
    %6 = arith.divf %4, %5 : vector<512x16xf32>
    %7 = vector.extract_strided_slice %0 {offsets = [0, 0], sizes = [512, 8], strides = [1, 1]} : vector<512x48xf32> to vector<512x8xf32>
    %8 = vector.extract_strided_slice %6 {offsets = [0, 0], sizes = [512, 8], strides = [1, 1]} : vector<512x16xf32> to vector<512x8xf32>
    %9 = arith.mulf %7, %8 : vector<512x8xf32>
    %cst_1 = arith.constant 1.67653251 : f32
    %10 = vector.broadcast %cst_1 : f32 to vector<512x8xf32>
    %11 = arith.mulf %9, %10 : vector<512x8xf32>
    %12 = vector.extract_strided_slice %6 {offsets = [0, 8], sizes = [512, 8], strides = [1, 1]} : vector<512x16xf32> to vector<512x8xf32>
    %cst_2 = arith.constant 1.8462286 : f32
    %13 = vector.broadcast %cst_2 : f32 to vector<512x8xf32>
    %14 = arith.mulf %12, %13 : vector<512x8xf32>
    %15 = vector.extract_strided_slice %0 {offsets = [0, 16], sizes = [512, 32], strides = [1, 1]} : vector<512x48xf32> to vector<512x32xf32>
    %c0_3 = arith.constant 0 : index
    %c0_4 = arith.constant 0 : index
    %16 = vector.load %arg2[%c0_3, %c0_4] : memref<8x32xf32, #tpu.memory_space<vmem>>, vector<8x32xf32>
    %cst_5 = arith.constant dense<0.000000e+00> : vector<512x32xf32>
    %17 = tpu.matmul %14, %16, %cst_5 {dimension_numbers = #tpu.dot_dimension_numbers<[1], [0], [0], [1], [0, 0, 1, 1], [], []>} : vector<512x8xf32>, vector<8x32xf32>, vector<512x32xf32> -> vector<512x32xf32>
    %c0_6 = arith.constant 0 : index
    %c0_7 = arith.constant 0 : index
    %18 = vector.load %arg3[%c0_6, %c0_7] : memref<512x40xf32, #tpu.memory_space<vmem>>, vector<512x8xf32>
    tpu.vector_store %arg3[%c0_6, %c0_7], %11 {strides = array<i32>} : memref<512x40xf32, #tpu.memory_space<vmem>>, vector<512x8xf32>,
    %19 = arith.mulf %15, %17 : vector<512x32xf32>
    %c0_8 = arith.constant 0 : index
    %c8 = arith.constant 8 : index
    %20 = vector.load %arg3[%c0_8, %c8] : memref<512x40xf32, #tpu.memory_space<vmem>>, vector<512x32xf32>
    tpu.vector_store %arg3[%c0_8, %c8], %19 {strides = array<i32>} : memref<512x40xf32, #tpu.memory_space<vmem>>, vector<512x32xf32>,
    return
  }
  func.func @transform_0(%arg0: i32) -> (i32, i32) {
    %c0_i32 = arith.constant 0 : i32
    %c0_i32_0 = arith.constant 0 : i32
    return %arg0, %c0_i32 : i32, i32
  }
  func.func @transform_1(%arg0: i32) -> (i32, i32) {
    %c0_i32 = arith.constant 0 : i32
    %c0_i32_0 = arith.constant 0 : i32
    %c0_i32_1 = arith.constant 0 : i32
    return %c0_i32, %c0_i32_0 : i32, i32
  }
  func.func @transform_2(%arg0: i32) -> (i32, i32) {
    %c0_i32 = arith.constant 0 : i32
    %c0_i32_0 = arith.constant 0 : i32
    return %arg0, %c0_i32 : i32, i32
  }
}

</mosaic_0001>

<bundles_post_ra>
// kernel: trgate.1
= control target key start
LH: loop header
LB: loop body
LE: loop exit
PB: predicated region body
PF: predicated region fallthrough
CT: control target
= control target key end

     0   :  { %s2914_s9 = smov 0   ;;  %s3841_s0 = inlined_call_operand.vmem [shape: f32[1024,48], index: 0, kind: input, shape index: {}]   ;;  %s3842_s1 = inlined_call_operand.vmem [shape: f32[8,32], index: 1, kind: input, shape index: {}]   ;;  %s3843_s2 = inlined_call_operand.vmem [shape: f32[1024,40], index: 2, kind: output, shape index: {}]  }
   0x1 LB: > { %s2255_s10 = sadd.s32 4294967295, %s2895_s9   ;;  %p2259_p0 = scmp.ge.s32.totalorder %s2895_s9, 1  ;;  %s2895_s9 = sphi %s2914_s9, %s12_s9  }
   0x2   : > { %p113_p1 = scmp.lt.s32.totalorder %s2895_s9, 3 }
   0x4   : > { %p114_p2 = pnand %p2259_p0, %p113_p1 }
   0x6   : > { %117 = sbr.rel (%p114_p2) target bundleno = 748 (0x2ec), region = 28 }
   0xd   : > { %s2260_s11 = sshll.u32 %s2255_s10, 6  ;;  %s2897_s16 = smov 120   ;;  %vm980_vm0 = vcmask 64512   ;;  %vm2134_vm1 = vcmask 326720  }
   0xe   : > { %p136_p3 = scmp.lt.s32.totalorder %s2260_s11, 127  ;;  %s2898_s19 = smov 16  }
  0x10   : > { %s3902_s11 = smov (!%p136_p3, %s2260_s11), 127 }
  0x11   : > { %s2261_s12 = sshll.u32 %s3902_s11, 3 }
  0x12   : > { %s2930_s15 = scalar_lea.vmem %s3841_s0, %s2261_s12  ;;  %s3382_s22 = scalar_lea.vmem %s3843_s2, %s2261_s12 }
  0x13   : > { %v147_v0 = vld [vmem:[%s2930_s15] sm:$0xff]  ;;  %v148_v1 = vld [vmem:[%s2930_s15 + $0x8] sm:$0xff]  ;;  %v149_v7 = vld [vmem:[%s2930_s15 + $0x10] sm:$0xff] }
  0x14   : > { %v179_v2 = vld [vmem:[%s2930_s15 + $0x100] sm:$0xff]  ;;  %v2264_v3 = vmul.f32 -1.442695, %v147_v0  ;;  %v2265_v4 = vmul.f32 -1.442695, %v148_v1  ;;  %v180_v6 = vld [vmem:[%s2930_s15 + $0x108] sm:$0xff] }
  0x15   : > { %v2296_v5 = vmul.f32 -1.442695, %v179_v2  ;;  %v181_v8 = vld [vmem:[%s2930_s15 + $0x110] sm:$0xff]  ;;  %v2297_v9 = vmul.f32 -1.442695, %v180_v6  ;;  %v150_v12 = vld [vmem:[%s2930_s15 + $0x18] sm:$0xff] }
  0x16   : > { %2569 = vpow2.f32 %v2264_v3  ;;  %v2266_v10 = vmul.f32 -1.442695, %v149_v7  ;;  %v2298_v11 = vmul.f32 -1.442695, %v181_v8  ;;  %v182_v13 = vld [vmem:[%s2930_s15 + $0x118] sm:$0xff]  ;;  %v151_v14 = vld [vmem:[%s2930_s15 + $0x20] sm:$0xff] }
  0x17   : > { %2571 = vpow2.f32 %v2265_v4  ;;  %v2267_v15 = vmul.f32 -1.442695, %v150_v12  ;;  %v2299_v16 = vmul.f32 -1.442695, %v182_v13  ;;  %v183_v17 = vld [vmem:[%s2930_s15 + $0x120] sm:$0xff]  ;;  %v152_v18 = vld [vmem:[%s2930_s15 + $0x28] sm:$0xff] }
  0x18   : > { %2573 = vpow2.f32 %v2296_v5  ;;  %v2268_v19 = vmul.f32 -1.442695, %v151_v14  ;;  %v184_v20 = vld [vmem:[%s2930_s15 + $0x128] sm:$0xff]  ;;  %v2300_v21 = vmul.f32 -1.442695, %v183_v17  ;;  %v153_v22 = vld [vmem:[%s2930_s15 + $0x30] sm:$0xff] }
  0x19   : > { %2575 = vpow2.f32 %v2297_v9  ;;  %v2269_v23 = vmul.f32 -1.442695, %v152_v18  ;;  %v2301_v24 = vmul.f32 -1.442695, %v184_v20  ;;  %v2270_v25 = vmul.f32 -1.442695, %v153_v22 }
  0x1a   : > { %2577 = vpow2.f32 %v2266_v10  ;;  %v185_v45 = vld [vmem:[%s2930_s15 + $0x130] sm:$0xff]  ;;  %v154_v48 = vld [vmem:[%s2930_s15 + $0x38] sm:$0xff]  ;;  %v155_v55 = vld [vmem:[%s2930_s15 + $0x40] sm:$0xff] }
  0x1b   : > { %2579 = vpow2.f32 %v2298_v11  ;;  %v186_v51 = vld [vmem:[%s2930_s15 + $0x138] sm:$0xff]  ;;  %v2302_v54 = vmul.f32 -1.442695, %v185_v45  ;;  %v2271_v58 = vmul.f32 -1.442695, %v154_v48  ;;  %v187_v59 = vld [vmem:[%s2930_s15 + $0x140] sm:$0xff] }
  0x1c   : > { %2581 = vpow2.f32 %v2267_v15  ;;  %v2303_v62 = vmul.f32 -1.442695, %v186_v51  ;;  %v156_v63 = vld [vmem:[%s2930_s15 + $0x48] sm:$0xff]  ;;  %v2272_v2 = vmul.f32 -1.442695, %v155_v55  ;;  %v157_v7 = vld [vmem:[%s2930_s15 + $0x50] sm:$0xff] }
  0x1d   : > { %2583 = vpow2.f32 %v2299_v16  ;;  %v188_v3 = vld [vmem:[%s2930_s15 + $0x148] sm:$0xff]  ;;  %v2304_v6 = vmul.f32 -1.442695, %v187_v59  ;;  %v2273_v10 = vmul.f32 -1.442695, %v156_v63  ;;  %v189_v11 = vld [vmem:[%s2930_s15 + $0x150] sm:$0xff] }
  0x1e   : > { %2585 = vpow2.f32 %v2268_v19  ;;  %v2305_v13 = vmul.f32 -1.442695, %v188_v3  ;;  %v158_v14 = vld [vmem:[%s2930_s15 + $0x58] sm:$0xff]  ;;  %v2274_v16 = vmul.f32 -1.442695, %v157_v7 }
  0x1f   : > { %2587 = vpow2.f32 %v2300_v21  ;;  %v190_v17 = vld [vmem:[%s2930_s15 + $0x158] sm:$0xff]  ;;  %v2306_v20 = vmul.f32 -1.442695, %v189_v11  ;;  %v159_v21 = vld [vmem:[%s2930_s15 + $0x60] sm:$0xff]  ;;  %v193_v11 = vld [vmem:[%s2930_s15 + $0x170] sm:$0xff] }
  0x20   : > { %v2570_v26 = vpop.eup %2569  ;;  %2589 = vpow2.f32 %v2269_v23 }
  0x21   : > { %v2572_v27 = vpop.eup %2571  ;;  %v403_v28 = vadd.f32 1.0, %v2570_v26  ;;  %2591 = vpow2.f32 %v2301_v24  ;;  %v2275_v24 = vmul.f32 -1.442695, %v158_v14 }
  0x22   : > { %v2574_v29 = vpop.eup %2573  ;;  %v404_v30 = vadd.f32 1.0, %v2572_v27  ;;  %2593 = vpow2.f32 %v2270_v25  ;;  %v191_v25 = vld [vmem:[%s2930_s15 + $0x160] sm:$0xff]  ;;  %v2307_v27 = vmul.f32 -1.442695, %v190_v17  ;;  %v162_v17 = vld [vmem:[%s2930_s15 + $0x78] sm:$0xff] }
  0x23   : > { %v2576_v31 = vpop.eup %2575  ;;  %2595 = vrcp.f32 %v403_v28  ;;  %v435_v32 = vadd.f32 1.0, %v2574_v29  ;;  %v2276_v29 = vmul.f32 -1.442695, %v159_v21 }
  0x24   : > { %v2578_v33 = vpop.eup %2577  ;;  %2597 = vrcp.f32 %v404_v30  ;;  %v436_v34 = vadd.f32 1.0, %v2576_v31 }
  0x25   : > { %v2580_v35 = vpop.eup %2579  ;;  %2599 = vrcp.f32 %v435_v32  ;;  %v405_v36 = vadd.f32 1.0, %v2578_v33  ;;  %v2308_v32 = vmul.f32 -1.442695, %v191_v25 }
  0x26   : > { %v2582_v37 = vpop.eup %2581  ;;  %2601 = vrcp.f32 %v436_v34  ;;  %v437_v38 = vadd.f32 1.0, %v2580_v35  ;;  %v787_v35 = vld [vmem:[%s3842_s1] sm:$0xff] }
  0x27   : > { %v2584_v39 = vpop.eup %2583  ;;  %2603 = vrcp.f32 %v405_v36  ;;  %v406_v40 = vadd.f32 1.0, %v2582_v37  ;;  %2459 = vmatprep.subr.mxu0 %v787_v35  ;;  %2557 = vmatprep.subr.mxu1 %v787_v35 }
  0x28   : > { %v2586_v41 = vpop.eup %2585  ;;  %2605 = vrcp.f32 %v437_v38  ;;  %v438_v42 = vadd.f32 1.0, %v2584_v39  ;;  %2460 = vmatpush3.msra.mxu0 %v787_v35  ;;  %2558 = vmatpush3.msra.mxu1 %v787_v35  ;;  %v195_v35 = vld [vmem:[%s2930_s15 + $0x180] sm:$0xff] }
  0x29   : > { %v2588_v43 = vpop.eup %2587  ;;  %2607 = vrcp.f32 %v406_v40  ;;  %v407_v44 = vadd.f32 1.0, %v2586_v41 }
  0x2a   : > { %v2590_v46 = vpop.eup %2589  ;;  %2609 = vrcp.f32 %v438_v42  ;;  %v439_v47 = vadd.f32 1.0, %v2588_v43 }
  0x2b   : > { %v2592_v49 = vpop.eup %2591  ;;  %2611 = vrcp.f32 %v407_v44  ;;  %v408_v50 = vadd.f32 1.0, %v2590_v46 }
  0x2c   : > { %v2594_v52 = vpop.eup %2593  ;;  %2613 = vrcp.f32 %v439_v47  ;;  %v440_v53 = vadd.f32 1.0, %v2592_v49 }
  0x2d   : > { %v2949_v56 = vpop.eup %2595  ;;  %2615 = vrcp.f32 %v408_v50  ;;  %v409_v57 = vadd.f32 1.0, %v2594_v52 }
  0x2e   : > { %v2952_v60 = vpop.eup %2597  ;;  %v723_v61 = vmul.f32 1.8462286, %v2949_v56  ;;  %2617 = vrcp.f32 %v440_v53 }
  0x2f   : > { %v2956_v0 = vpop.eup %2599  ;;  %v724_v1 = vmul.f32 1.8462286, %v2952_v60  ;;  %2619 = vrcp.f32 %v409_v57 }
  0x30   : > { %v2960_v4 = vpop.eup %2601  ;;  %852 = vrot.lane.b32.xlu0 %v723_v61, %s2897_s16  ;;  %v755_v5 = vmul.f32 1.8462286, %v2956_v0  ;;  %2621 = vpow2.f32 %v2302_v54  ;;  %v160_v61 = vld [vmem:[%s2930_s15 + $0x68] sm:$0xff] }
  0x31   : > { %v2965_v8 = vpop.eup %2603  ;;  %854 = vrot.lane.b32.xlu1 %v724_v1, %s2897_s16  ;;  %v756_v9 = vmul.f32 1.8462286, %v2960_v4  ;;  %2623 = vpow2.f32 %v2271_v58 }
  0x32   : > { %v2970_v12 = vpop.eup %2605  ;;  %2625 = vpow2.f32 %v2303_v62  ;;  %v725_v19 = vmul.f32 1.8462286, %v2965_v8 }
  0x33   : > { %v2973_v15 = vpop.eup %2607  ;;  %2627 = vpow2.f32 %v2272_v2  ;;  %v757_v23 = vmul.f32 1.8462286, %v2970_v12  ;;  %v192_v2 = vld [vmem:[%s2930_s15 + $0x168] sm:$0xff] }
  0x34   : > { %v2976_v18 = vpop.eup %2609  ;;  %916 = vrot.lane.b32.xlu0 %v755_v5, %s2897_s16  ;;  %2629 = vpow2.f32 %v2304_v6  ;;  %v726_v31 = vmul.f32 1.8462286, %v2973_v15  ;;  %v161_v6 = vld [vmem:[%s2930_s15 + $0x70] sm:$0xff] }
  0x35   : > { %v2981_v22 = vpop.eup %2611  ;;  %918 = vrot.lane.b32.xlu1 %v756_v9, %s2897_s16  ;;  %2631 = vpow2.f32 %v2273_v10  ;;  %v758_v34 = vmul.f32 1.8462286, %v2976_v18  ;;  %v2277_v10 = vmul.f32 -1.442695, %v160_v61  ;;  %v2278_v21 = vmul.f32 -1.442695, %v161_v6 }
  0x36   : > { %v2986_v26 = vpop.eup %2613  ;;  %2633 = vpow2.f32 %v2305_v13  ;;  %v727_v40 = vmul.f32 1.8462286, %v2981_v22 }
  0x37   : > { %v2988_v28 = vpop.eup %2615  ;;  %2635 = vpow2.f32 %v2274_v16  ;;  %v759_v43 = vmul.f32 1.8462286, %v2986_v26  ;;  %v2309_v16 = vmul.f32 -1.442695, %v192_v2 }
  0x38   : > { %v2990_v30 = vpop.eup %2617  ;;  %856 = vrot.lane.b32.xlu0 %v725_v19, %s2897_s16  ;;  %2637 = vpow2.f32 %v2306_v20  ;;  %v728_v50 = vmul.f32 1.8462286, %v2988_v28 }
  0x39   : > { %v2994_v33 = vpop.eup %2619  ;;  %920 = vrot.lane.b32.xlu1 %v757_v23, %s2897_s16  ;;  %2639 = vpow2.f32 %v2275_v24  ;;  %v760_v53 = vmul.f32 1.8462286, %v2990_v30  ;;  %v194_v23 = vld [vmem:[%s2930_s15 + $0x178] sm:$0xff] }
  0x3a   : > { %v2622_v36 = vpop.eup %2621  ;;  %2641 = vpow2.f32 %v2307_v27  ;;  %v729_v63 = vmul.f32 1.8462286, %v2994_v33  ;;  %v2310_v27 = vmul.f32 -1.442695, %v193_v11 }
  0x3b   : > { %v2624_v37 = vpop.eup %2623  ;;  %v441_v38 = vadd.f32 1.0, %v2622_v36  ;;  %2643 = vpow2.f32 %v2276_v29  ;;  %v163_v29 = vld [vmem:[%s2930_s15 + $0x80] sm:$0xff] }
  0x3c   : > { %v2626_v39 = vpop.eup %2625  ;;  %858 = vrot.lane.b32.xlu0 %v726_v31, %s2897_s16  ;;  %v410_v41 = vadd.f32 1.0, %v2624_v37  ;;  %2645 = vpow2.f32 %v2308_v32  ;;  %v2311_v37 = vmul.f32 -1.442695, %v194_v23 }
  0x3d   : > { %v2628_v42 = vpop.eup %2627  ;;  %922 = vrot.lane.b32.xlu1 %v758_v34, %s2897_s16  ;;  %2647 = vrcp.f32 %v441_v38  ;;  %v442_v44 = vadd.f32 1.0, %v2626_v39  ;;  %v2279_v34 = vmul.f32 -1.442695, %v162_v17  ;;  %v164_v38 = vld [vmem:[%s2930_s15 + $0x88] sm:$0xff] }
  0x3e   : > { %v2630_v45 = vpop.eup %2629  ;;  %2649 = vrcp.f32 %v410_v41  ;;  %v411_v46 = vadd.f32 1.0, %v2628_v42  ;;  %v2280_v41 = vmul.f32 -1.442695, %v163_v29  ;;  %v196_v42 = vld [vmem:[%s2930_s15 + $0x188] sm:$0xff] }
  0x3f   : > { %v2632_v47 = vpop.eup %2631  ;;  %2651 = vrcp.f32 %v442_v44  ;;  %v443_v48 = vadd.f32 1.0, %v2630_v45  ;;  %v2312_v44 = vmul.f32 -1.442695, %v195_v35  ;;  %v165_v45 = vld [vmem:[%s2930_s15 + $0x90] sm:$0xff] }
  0x40   : > { %v2634_v49 = vpop.eup %2633  ;;  %860 = vrot.lane.b32.xlu0 %v727_v40, %s2897_s16  ;;  %2653 = vrcp.f32 %v411_v46  ;;  %v412_v51 = vadd.f32 1.0, %v2632_v47 }
  0x41   : > { %v2636_v52 = vpop.eup %2635  ;;  %924 = vrot.lane.b32.xlu1 %v759_v43, %s2897_s16  ;;  %2655 = vrcp.f32 %v443_v48  ;;  %v444_v54 = vadd.f32 1.0, %v2634_v49  ;;  %v2281_v48 = vmul.f32 -1.442695, %v164_v38  ;;  %v197_v49 = vld [vmem:[%s2930_s15 + $0x190] sm:$0xff] }
  0x42   : > { %v2638_v55 = vpop.eup %2637  ;;  %2657 = vrcp.f32 %v412_v51  ;;  %v413_v57 = vadd.f32 1.0, %v2636_v52  ;;  %v2313_v51 = vmul.f32 -1.442695, %v196_v42  ;;  %v166_v52 = vld [vmem:[%s2930_s15 + $0x98] sm:$0xff] }
  0x43   : > { %v2640_v58 = vpop.eup %2639  ;;  %2659 = vrcp.f32 %v444_v54  ;;  %v445_v59 = vadd.f32 1.0, %v2638_v55  ;;  %v2282_v55 = vmul.f32 -1.442695, %v165_v45 }
  0x44   : > { %v2642_v62 = vpop.eup %2641  ;;  %862 = vrot.lane.b32.xlu0 %v728_v50, %s2897_s16  ;;  %2661 = vrcp.f32 %v413_v57  ;;  %v414_v1 = vadd.f32 1.0, %v2640_v58  ;;  %v2314_v58 = vmul.f32 -1.442695, %v197_v49 }
  0x45   : > { %v2644_v3 = vpop.eup %2643  ;;  %926 = vrot.lane.b32.xlu1 %v760_v53, %s2897_s16  ;;  %2663 = vrcp.f32 %v445_v59  ;;  %v446_v5 = vadd.f32 1.0, %v2642_v62  ;;  %v2283_v62 = vmul.f32 -1.442695, %v166_v52 }
  0x46   : > { %v2646_v7 = vpop.eup %2645  ;;  %2665 = vrcp.f32 %v414_v1  ;;  %v415_v9 = vadd.f32 1.0, %v2644_v3 }
  0x47   : > { %v3016_v13 = vpop.eup %2647  ;;  %2667 = vrcp.f32 %v446_v5  ;;  %v447_v14 = vadd.f32 1.0, %v2646_v7 }
  0x48   : > { %v3019_v19 = vpop.eup %2649  ;;  %864 = vrot.lane.b32.xlu0 %v729_v63, %s2897_s16  ;;  %v761_v20 = vmul.f32 1.8462286, %v3016_v13  ;;  %2669 = vrcp.f32 %v415_v9 }
  0x49   : > { %v3024_v24 = vpop.eup %2651  ;;  %v730_v25 = vmul.f32 1.8462286, %v3019_v19  ;;  %2671 = vrcp.f32 %v447_v14 }
  0x4a   : > { %v3028_v31 = vpop.eup %2653  ;;  %928 = vrot.lane.b32.xlu1 %v761_v20, %s2897_s16  ;;  %v762_v32 = vmul.f32 1.8462286, %v3024_v24  ;;  %2673 = vpow2.f32 %v2277_v10 }
  0x4b   : > { %v3033_v36 = vpop.eup %2655  ;;  %2675 = vpow2.f32 %v2309_v16  ;;  %v731_v40 = vmul.f32 1.8462286, %v3028_v31 }
  0x4c   : > { %v3036_v39 = vpop.eup %2657  ;;  %866 = vrot.lane.b32.xlu0 %v730_v25, %s2897_s16  ;;  %2677 = vpow2.f32 %v2278_v21  ;;  %v763_v47 = vmul.f32 1.8462286, %v3033_v36 }
  0x4d   : > { %v3041_v43 = vpop.eup %2659  ;;  %2679 = vpow2.f32 %v2310_v27  ;;  %v732_v54 = vmul.f32 1.8462286, %v3036_v39 }
  0x4e   : > { %v3044_v46 = vpop.eup %2661  ;;  %930 = vrot.lane.b32.xlu1 %v762_v32, %s2897_s16  ;;  %2681 = vpow2.f32 %v2279_v34  ;;  %v764_v61 = vmul.f32 1.8462286, %v3041_v43 }
  0x4f   : > { %v3049_v50 = vpop.eup %2663  ;;  %2683 = vpow2.f32 %v2311_v37  ;;  %v733_v2 = vmul.f32 1.8462286, %v3044_v46 }
  0x50   : > { %v3052_v53 = vpop.eup %2665  ;;  %868 = vrot.lane.b32.xlu0 %v731_v40, %s2897_s16  ;;  %2685 = vpow2.f32 %v2280_v41  ;;  %v765_v7 = vmul.f32 1.8462286, %v3049_v50  ;;  %v198_v41 = vld [vmem:[%s2930_s15 + $0x198] sm:$0xff] }
  0x51   : > { %v3056_v57 = vpop.eup %2667  ;;  %2687 = vpow2.f32 %v2312_v44  ;;  %v734_v16 = vmul.f32 1.8462286, %v3052_v53 }
  0x52   : > { %v3058_v59 = vpop.eup %2669  ;;  %932 = vrot.lane.b32.xlu1 %v763_v47, %s2897_s16  ;;  %2689 = vpow2.f32 %v2281_v48  ;;  %v766_v25 = vmul.f32 1.8462286, %v3056_v57  ;;  %v167_v47 = vld [vmem:[%s2930_s15 + $0xa0] sm:$0xff] }
  0x53   : > { %v3062_v63 = vpop.eup %2671  ;;  %2691 = vpow2.f32 %v2313_v51  ;;  %v735_v35 = vmul.f32 1.8462286, %v3058_v59  ;;  %v199_v51 = vld [vmem:[%s2930_s15 + $0x1a0] sm:$0xff] }
  0x54   : > { %v2674_v1 = vpop.eup %2673  ;;  %870 = vrot.lane.b32.xlu0 %v732_v54, %s2897_s16  ;;  %2693 = vpow2.f32 %v2282_v55  ;;  %v767_v44 = vmul.f32 1.8462286, %v3062_v63  ;;  %v2315_v55 = vmul.f32 -1.442695, %v198_v41 }
  0x55   : > { %v2676_v3 = vpop.eup %2675  ;;  %v416_v5 = vadd.f32 1.0, %v2674_v1  ;;  %2695 = vpow2.f32 %v2314_v58  ;;  %v168_v58 = vld [vmem:[%s2930_s15 + $0xa8] sm:$0xff]  ;;  %v2284_v1 = vmul.f32 -1.442695, %v167_v47 }
  0x56   : > { %v2678_v6 = vpop.eup %2677  ;;  %934 = vrot.lane.b32.xlu1 %v764_v61, %s2897_s16  ;;  %v448_v9 = vadd.f32 1.0, %v2676_v3  ;;  %2697 = vpow2.f32 %v2283_v62 }
  0x57   : > { %v2680_v10 = vpop.eup %2679  ;;  %2699 = vrcp.f32 %v416_v5  ;;  %v417_v11 = vadd.f32 1.0, %v2678_v6  ;;  %v2316_v6 = vmul.f32 -1.442695, %v199_v51 }
  0x58   : > { %v2682_v14 = vpop.eup %2681  ;;  %872 = vrot.lane.b32.xlu0 %v733_v2, %s2897_s16  ;;  %2701 = vrcp.f32 %v448_v9  ;;  %v449_v17 = vadd.f32 1.0, %v2680_v10  ;;  %v200_v2 = vld [vmem:[%s2930_s15 + $0x1a8] sm:$0xff] }
  0x59   : > { %v2684_v20 = vpop.eup %2683  ;;  %2703 = vrcp.f32 %v417_v11  ;;  %v418_v21 = vadd.f32 1.0, %v2682_v14  ;;  %v2285_v11 = vmul.f32 -1.442695, %v168_v58  ;;  %v201_v14 = vld [vmem:[%s2930_s15 + $0x1b0] sm:$0xff] }
  0x5a   : > { %v2686_v23 = vpop.eup %2685  ;;  %936 = vrot.lane.b32.xlu1 %v765_v7, %s2897_s16  ;;  %2705 = vrcp.f32 %v449_v17  ;;  %v450_v27 = vadd.f32 1.0, %v2684_v20  ;;  %v169_v7 = vld [vmem:[%s2930_s15 + $0xb0] sm:$0xff]  ;;  %v2317_v20 = vmul.f32 -1.442695, %v200_v2 }
  0x5b   : > { %v2688_v29 = vpop.eup %2687  ;;  %2707 = vrcp.f32 %v418_v21  ;;  %v419_v32 = vadd.f32 1.0, %v2686_v23  ;;  %v170_v21 = vld [vmem:[%s2930_s15 + $0xb8] sm:$0xff] }
  0x5c   : > { %v2690_v34 = vpop.eup %2689  ;;  %874 = vrot.lane.b32.xlu0 %v734_v16, %s2897_s16  ;;  %2709 = vrcp.f32 %v450_v27  ;;  %v451_v37 = vadd.f32 1.0, %v2688_v29  ;;  %v202_v27 = vld [vmem:[%s2930_s15 + $0x1b8] sm:$0xff] }
  0x5d   : > { %v2692_v38 = vpop.eup %2691  ;;  %2711 = vrcp.f32 %v419_v32  ;;  %v420_v40 = vadd.f32 1.0, %v2690_v34  ;;  %v2318_v34 = vmul.f32 -1.442695, %v201_v14 }
  0x5e   : > { %v2694_v42 = vpop.eup %2693  ;;  %938 = vrot.lane.b32.xlu1 %v766_v25, %s2897_s16  ;;  %2713 = vrcp.f32 %v451_v37  ;;  %v452_v45 = vadd.f32 1.0, %v2692_v38  ;;  %v2286_v25 = vmul.f32 -1.442695, %v169_v7  ;;  %v2287_v38 = vmul.f32 -1.442695, %v170_v21 }
  0x5f   : > { %v2696_v48 = vpop.eup %2695  ;;  %2715 = vrcp.f32 %v420_v40  ;;  %v421_v49 = vadd.f32 1.0, %v2694_v42  ;;  %v203_v40 = vld [vmem:[%s2930_s15 + $0x1c0] sm:$0xff] }
  0x60   : > { %v2698_v52 = vpop.eup %2697  ;;  %876 = vrot.lane.b32.xlu0 %v735_v35, %s2897_s16  ;;  %2717 = vrcp.f32 %v452_v45  ;;  %v453_v54 = vadd.f32 1.0, %v2696_v48  ;;  %v171_v35 = vld [vmem:[%s2930_s15 + $0xc0] sm:$0xff]  ;;  %v172_v45 = vld [vmem:[%s2930_s15 + $0xc8] sm:$0xff] }
  0x61   : > { %v3081_v61 = vpop.eup %2699  ;;  %2719 = vrcp.f32 %v421_v49  ;;  %v422_v62 = vadd.f32 1.0, %v2698_v52  ;;  %v2288_v48 = vmul.f32 -1.442695, %v171_v35  ;;  %v204_v49 = vld [vmem:[%s2930_s15 + $0x1c8] sm:$0xff]  ;;  %v2289_v58 = vmul.f32 -1.442695, %v172_v45 }
  0x62   : > { %v3084_v3 = vpop.eup %2701  ;;  %940 = vrot.lane.b32.xlu1 %v767_v44, %s2897_s16  ;;  %v736_v5 = vmul.f32 1.8462286, %v3081_v61  ;;  %2721 = vrcp.f32 %v453_v54  ;;  %v2319_v44 = vmul.f32 -1.442695, %v202_v27  ;;  %v2320_v54 = vmul.f32 -1.442695, %v203_v40 }
  0x63   : > { %v3089_v9 = vpop.eup %2703  ;;  %v768_v10 = vmul.f32 1.8462286, %v3084_v3  ;;  %2723 = vrcp.f32 %v422_v62  ;;  %v2321_v2 = vmul.f32 -1.442695, %v204_v49 }
  0x64   : > { %v3093_v16 = vpop.eup %2705  ;;  %878 = vrot.lane.b32.xlu0 %v736_v5, %s2897_s16  ;;  %v737_v17 = vmul.f32 1.8462286, %v3089_v9  ;;  %2725 = vpow2.f32 %v2315_v55 }
  0x65   : > { %v3098_v23 = vpop.eup %2707  ;;  %2727 = vpow2.f32 %v2284_v1  ;;  %v769_v32 = vmul.f32 1.8462286, %v3093_v16 }
  0x66   : > { %v3101_v29 = vpop.eup %2709  ;;  %942 = vrot.lane.b32.xlu1 %v768_v10, %s2897_s16  ;;  %2729 = vpow2.f32 %v2316_v6  ;;  %v738_v42 = vmul.f32 1.8462286, %v3098_v23 }
  0x67   : > { %v3106_v37 = vpop.eup %2711  ;;  %2731 = vpow2.f32 %v2285_v11  ;;  %v770_v52 = vmul.f32 1.8462286, %v3101_v29 }
  0x68   : > { %v3109_v41 = vpop.eup %2713  ;;  %880 = vrot.lane.b32.xlu0 %v737_v17, %s2897_s16  ;;  %2733 = vpow2.f32 %v2317_v20  ;;  %v739_v1 = vmul.f32 1.8462286, %v3106_v37 }
  0x69   : > { %v3114_v47 = vpop.eup %2715  ;;  %2735 = vpow2.f32 %v2286_v25  ;;  %v771_v7 = vmul.f32 1.8462286, %v3109_v41 }
  0x6a   : > { %v3117_v51 = vpop.eup %2717  ;;  %944 = vrot.lane.b32.xlu1 %v769_v32, %s2897_s16  ;;  %2737 = vpow2.f32 %v2318_v34  ;;  %v740_v17 = vmul.f32 1.8462286, %v3114_v47 }
  0x6b   : > { %v3121_v55 = vpop.eup %2719  ;;  %2739 = vpow2.f32 %v2287_v38  ;;  %v772_v32 = vmul.f32 1.8462286, %v3117_v51 }
  0x6c   : > { %v3123_v62 = vpop.eup %2721  ;;  %882 = vrot.lane.b32.xlu0 %v738_v42, %s2897_s16  ;;  %2741 = vpow2.f32 %v2319_v44  ;;  %v741_v42 = vmul.f32 1.8462286, %v3121_v55 }
  0x6d   : > { %v3127_v5 = vpop.eup %2723  ;;  %2743 = vpow2.f32 %v2288_v48 }
  0x6e   : > { %v2726_v6 = vpop.eup %2725  ;;  %946 = vrot.lane.b32.xlu1 %v770_v52, %s2897_s16  ;;  %2745 = vpow2.f32 %v2320_v54  ;;  %v773_v52 = vmul.f32 1.8462286, %v3123_v62 }
  0x6f   : > { %v2728_v10 = vpop.eup %2727  ;;  %v454_v11 = vadd.f32 1.0, %v2726_v6  ;;  %2747 = vpow2.f32 %v2289_v58 }
  0x70   : > { %v2730_v14 = vpop.eup %2729  ;;  %884 = vrot.lane.b32.xlu0 %v739_v1, %s2897_s16  ;;  %v423_v20 = vadd.f32 1.0, %v2728_v10  ;;  %2749 = vpow2.f32 %v2321_v2  ;;  %v173_v2 = vld [vmem:[%s2930_s15 + $0xd0] sm:$0xff] }
  0x71   : > { %v2732_v21 = vpop.eup %2731  ;;  %2751 = vrcp.f32 %v454_v11  ;;  %v455_v25 = vadd.f32 1.0, %v2730_v14  ;;  %v205_v11 = vld [vmem:[%s2930_s15 + $0x1d0] sm:$0xff] }
  0x72   : > { %v2734_v27 = vpop.eup %2733  ;;  %948 = vrot.lane.b32.xlu1 %v771_v7, %s2897_s16  ;;  %2753 = vrcp.f32 %v423_v20  ;;  %v424_v34 = vadd.f32 1.0, %v2732_v21  ;;  %v742_v7 = vmul.f32 1.8462286, %v3127_v5  ;;  %v174_v20 = vld [vmem:[%s2930_s15 + $0xd8] sm:$0xff] }
  0x73   : > { %v2736_v35 = vpop.eup %2735  ;;  %2755 = vrcp.f32 %v455_v25  ;;  %v456_v38 = vadd.f32 1.0, %v2734_v27  ;;  %v2290_v27 = vmul.f32 -1.442695, %v173_v2 }
  0x74   : > { %v2738_v40 = vpop.eup %2737  ;;  %886 = vrot.lane.b32.xlu0 %v740_v17, %s2897_s16  ;;  %2757 = vrcp.f32 %v424_v34  ;;  %v425_v44 = vadd.f32 1.0, %v2736_v35 }
  0x75   : > { %v2740_v45 = vpop.eup %2739  ;;  %2759 = vrcp.f32 %v456_v38  ;;  %v457_v48 = vadd.f32 1.0, %v2738_v40  ;;  %v2322_v38 = vmul.f32 -1.442695, %v205_v11  ;;  %v175_v40 = vld [vmem:[%s2930_s15 + $0xe0] sm:$0xff] }
  0x76   : > { %v2742_v49 = vpop.eup %2741  ;;  %950 = vrot.lane.b32.xlu1 %v772_v32, %s2897_s16  ;;  %2761 = vrcp.f32 %v425_v44  ;;  %v426_v54 = vadd.f32 1.0, %v2740_v45  ;;  %v206_v32 = vld [vmem:[%s2930_s15 + $0x1d8] sm:$0xff]  ;;  %v2291_v45 = vmul.f32 -1.442695, %v174_v20 }
  0x77   : > { %v2744_v58 = vpop.eup %2743  ;;  %2763 = vrcp.f32 %v457_v48  ;;  %v458_v1 = vadd.f32 1.0, %v2742_v49  ;;  %v207_v48 = vld [vmem:[%s2930_s15 + $0x1e0] sm:$0xff] }
  0x78   : > { %v2746_v6 = vpop.eup %2745  ;;  %888 = vrot.lane.b32.xlu0 %v741_v42, %s2897_s16  ;;  %2765 = vrcp.f32 %v426_v54  ;;  %v427_v10 = vadd.f32 1.0, %v2744_v58  ;;  %v2323_v54 = vmul.f32 -1.442695, %v206_v32  ;;  %v176_v58 = vld [vmem:[%s2930_s15 + $0xe8] sm:$0xff]  ;;  %v2324_v11 = vmul.f32 -1.442695, %v207_v48 }
  0x79   : > { %v2748_v14 = vpop.eup %2747  ;;  %2767 = vrcp.f32 %v458_v1  ;;  %v459_v17 = vadd.f32 1.0, %v2746_v6  ;;  %v2292_v6 = vmul.f32 -1.442695, %v175_v40  ;;  %v209_v32 = vld [vmem:[%s2930_s15 + $0x1f0] sm:$0xff] }
  0x7a   : > { %v2750_v21 = vpop.eup %2749  ;;  %952 = vrot.lane.b32.xlu1 %v773_v52, %s2897_s16  ;;  %2769 = vrcp.f32 %v427_v10  ;;  %v428_v25 = vadd.f32 1.0, %v2748_v14  ;;  %v177_v14 = vld [vmem:[%s2930_s15 + $0xf0] sm:$0xff] }
  0x7b   : > { %v3146_v34 = vpop.eup %2751  ;;  %2771 = vrcp.f32 %v459_v17  ;;  %v460_v35 = vadd.f32 1.0, %v2750_v21  ;;  %v2293_v21 = vmul.f32 -1.442695, %v176_v58  ;;  %v2294_v40 = vmul.f32 -1.442695, %v177_v14 }
  0x7c   : > { %v3149_v42 = vpop.eup %2753  ;;  %890 = vrot.lane.b32.xlu0 %v742_v7, %s2897_s16  ;;  %v774_v44 = vmul.f32 1.8462286, %v3146_v34  ;;  %2773 = vrcp.f32 %v428_v25  ;;  %v208_v7 = vld [vmem:[%s2930_s15 + $0x1e8] sm:$0xff]  ;;  %v2326_v58 = vmul.f32 -1.442695, %v209_v32 }
  0x7d   : > { %v3154_v49 = vpop.eup %2755  ;;  %v743_v52 = vmul.f32 1.8462286, %v3149_v42  ;;  %2775 = vrcp.f32 %v460_v35 }
  0x7e   : > { %3863 = vst [vmem:[#allocation2_spill] sm:$0xff] %v3154_v49  ;;  %v3158_v1 = vpop.eup %2757  ;;  %954 = vrot.lane.b32.xlu1 %v774_v44, %s2897_s16  ;;  %v775_v2 = vmul.f32 1.8462286, %v3154_v49  ;;  %2777 = vpow2.f32 %v2290_v27  ;;  %v2325_v27 = vmul.f32 -1.442695, %v208_v7  ;;  %v178_v44 = vld [vmem:[%s2930_s15 + $0xf8] sm:$0xff] }
  0x7f   : > { %v3163_v10 = vpop.eup %2759  ;;  %2779 = vpow2.f32 %v2322_v38  ;;  %v744_v20 = vmul.f32 1.8462286, %v3158_v1 }
  0x80   : > { %3864 = vst [vmem:[#allocation3_spill] sm:$0xff] %v3163_v10  ;;  %v3166_v17 = vpop.eup %2761  ;;  %892 = vrot.lane.b32.xlu0 %v743_v52, %s2897_s16  ;;  %2781 = vpow2.f32 %v2291_v45  ;;  %v776_v38 = vmul.f32 1.8462286, %v3163_v10  ;;  %v210_v52 = vld [vmem:[%s2930_s15 + $0x1f8] sm:$0xff] }
  0x81   : > { %3865 = vst [vmem:[#allocation4_spill] sm:$0xff] %v3166_v17  ;;  %v3170_v25 = vpop.eup %2763  ;;  %2783 = vpow2.f32 %v2323_v54  ;;  %v745_v54 = vmul.f32 1.8462286, %v3166_v17 }
  0x82   : > { %3866 = vst [vmem:[#allocation5_spill] sm:$0xff] %v3170_v25  ;;  %v3173_v35 = vpop.eup %2765  ;;  %956 = vrot.lane.b32.xlu1 %v775_v2, %s2897_s16  ;;  %2785 = vpow2.f32 %v2292_v6  ;;  %v2295_v2 = vmul.f32 -1.442695, %v178_v44  ;;  %v777_v6 = vmul.f32 1.8462286, %v3170_v25 }
  0x83   : > { %v3178_v48 = vpop.eup %2767  ;;  %2787 = vpow2.f32 %v2324_v11  ;;  %v2327_v11 = vmul.f32 -1.442695, %v210_v52 }
  0x84   : > { %v3181_v45 = vpop.eup %2769  ;;  %894 = vrot.lane.b32.xlu0 %v744_v20, %s2897_s16  ;;  %2789 = vpow2.f32 %v2293_v21  ;;  %v746_v20 = vmul.f32 1.8462286, %v3173_v35 }
  0x85   : > { %3867 = vst [vmem:[#allocation6_spill] sm:$0xff] %v3181_v45  ;;  %v3185_v7 = vpop.eup %2771  ;;  %2791 = vpow2.f32 %v2325_v27 }
  0x86   : > { %3868 = vst [vmem:[#allocation7_spill] sm:$0xff] %v3185_v7  ;;  %v3187_v49 = vpop.eup %2773  ;;  %958 = vrot.lane.b32.xlu1 %v776_v38, %s2897_s16  ;;  %2793 = vpow2.f32 %v2294_v40  ;;  %v778_v38 = vmul.f32 1.8462286, %v3178_v48 }
  0x87   : > { %v3191_v14 = vpop.eup %2775  ;;  %2795 = vpow2.f32 %v2326_v58 }
  0x88   : > { %3869 = vst [vmem:[#allocation8_spill] sm:$0xff] %v3191_v14  ;;  %v2778_v10 = vpop.eup %2777  ;;  %896 = vrot.lane.b32.xlu0 %v745_v54, %s2897_s16  ;;  %2797 = vpow2.f32 %v2295_v2  ;;  %v747_v54 = vmul.f32 1.8462286, %v3181_v45 }
  0x89   : > { %v2780_v21 = vpop.eup %2779  ;;  %v429_v32 = vadd.f32 1.0, %v2778_v10  ;;  %2799 = vpow2.f32 %v2327_v11 }
  0x8a   : > { %v2782_v27 = vpop.eup %2781  ;;  %960 = vrot.lane.b32.xlu1 %v777_v6, %s2897_s16  ;;  %v461_v44 = vadd.f32 1.0, %v2780_v21  ;;  %v779_v6 = vmul.f32 1.8462286, %v3185_v7 }
  0x8b   : > { %v2784_v40 = vpop.eup %2783  ;;  %2801 = vrcp.f32 %v429_v32  ;;  %v430_v52 = vadd.f32 1.0, %v2782_v27 }
  0x8c   : > { %v2786_v25 = vpop.eup %2785  ;;  %898 = vrot.lane.b32.xlu0 %v746_v20, %s2897_s16  ;;  %2803 = vrcp.f32 %v461_v44  ;;  %v462_v58 = vadd.f32 1.0, %v2784_v40  ;;  %v748_v20 = vmul.f32 1.8462286, %v3187_v49 }
  0x8d   : > { %v2788_v17 = vpop.eup %2787  ;;  %2805 = vrcp.f32 %v430_v52  ;;  %v431_v10 = vadd.f32 1.0, %v2786_v25  ;;  %v780_v25 = vmul.f32 1.8462286, %v3191_v14 }
  0x8e   : > { %v2790_v2 = vpop.eup %2789  ;;  %962 = vrot.lane.b32.xlu1 %v778_v38, %s2897_s16  ;;  %2807 = vrcp.f32 %v462_v58  ;;  %v463_v11 = vadd.f32 1.0, %v2788_v17 }
  0x8f   : > { %v2792_v21 = vpop.eup %2791  ;;  %2809 = vrcp.f32 %v431_v10  ;;  %v432_v32 = vadd.f32 1.0, %v2790_v2 }
  0x90   : > { %v2794_v27 = vpop.eup %2793  ;;  %900 = vrot.lane.b32.xlu0 %v747_v54, %s2897_s16  ;;  %2811 = vrcp.f32 %v463_v11  ;;  %v464_v44 = vadd.f32 1.0, %v2792_v21 }
  0x91   : > { %v2796_v40 = vpop.eup %2795  ;;  %2813 = vrcp.f32 %v432_v32  ;;  %v433_v52 = vadd.f32 1.0, %v2794_v27 }
  0x92   : > { %964 = vrot.lane.b32.xlu1 %v779_v6, %s2897_s16  ;;  %v2798_v38 = vpop.eup %2797  ;;  %2815 = vrcp.f32 %v464_v44  ;;  %v465_v10 = vadd.f32 1.0, %v2796_v40 }
  0x93   : > { %v2800_v58 = vpop.eup %2799  ;;  %2817 = vrcp.f32 %v433_v52  ;;  %v434_v21 = vadd.f32 1.0, %v2798_v38 }
  0x94   : > { %902 = vrot.lane.b32.xlu0 %v748_v20, %s2897_s16  ;;  %2819 = vrcp.f32 %v465_v10  ;;  %v466_v44 = vadd.f32 1.0, %v2800_v58 }
  0x95   : > { %v3206_v17 = vpop.eup %2801  ;;  %2821 = vrcp.f32 %v434_v21 }
  0x96   : > { %3870 = vst [vmem:[#allocation9_spill] sm:$0xff] %v3206_v17  ;;  %v3208_v54 = vpop.eup %2803  ;;  %966 = vrot.lane.b32.xlu1 %v780_v25, %s2897_s16  ;;  %v749_v2 = vmul.f32 1.8462286, %v3206_v17  ;;  %2823 = vrcp.f32 %v466_v44 }
  0x97   : > { %3871 = vst [vmem:[#allocation10_spill] sm:$0xff] %v3208_v54  ;;  %v3212_v11 = vpop.eup %2805  ;;  %v781_v6 = vmul.f32 1.8462286, %v3208_v54 }
  0x98   : > { %3872 = vst [vmem:[#allocation11_spill] sm:$0xff] %v3212_v11  ;;  %v3215_v32 = vpop.eup %2807  ;;  %904 = vrot.lane.b32.xlu0 %v749_v2, %s2897_s16  ;;  %v750_v27 = vmul.f32 1.8462286, %v3212_v11  ;;  %v2831_v11 = vld [vmem:[%s2930_s15 + $0x118] sm:$0xff] }
  0x99   : > { %3873 = vst [vmem:[#allocation12_spill] sm:$0xff] %v3215_v32  ;;  %v3219_v20 = vpop.eup %2809  ;;  %v782_v40 = vmul.f32 1.8462286, %v3215_v32 }
  0x9a   : > { %3874 = vst [vmem:[#allocation13_spill] sm:$0xff] %v3219_v20  ;;  %968 = vrot.lane.b32.xlu1 %v781_v6, %s2897_s16  ;;  %v3223_v25 = vpop.eup %2811  ;;  %v751_v38 = vmul.f32 1.8462286, %v3219_v20 }
  0x9b   : > { %3875 = vst [vmem:[#allocation14_spill] sm:$0xff] %v3223_v25  ;;  %v3227_v52 = vpop.eup %2813  ;;  %v783_v2 = vmul.f32 1.8462286, %v3223_v25 }
  0x9c   : > { %906 = vrot.lane.b32.xlu0 %v750_v27, %s2897_s16  ;;  %3876 = vst [vmem:[#allocation15_spill] sm:$0xff] %v3227_v52  ;;  %v3231_v10 = vpop.eup %2815  ;;  %v752_v58 = vmul.f32 1.8462286, %v3227_v52 }
  0x9d   : > { %3877 = vst [vmem:[#allocation16_spill] sm:$0xff] %v3231_v10  ;;  %v3235_v6 = vpop.eup %2817  ;;  %v784_v27 = vmul.f32 1.8462286, %v3231_v10 }
  0x9e   : > { %970 = vrot.lane.b32.xlu1 %v782_v40, %s2897_s16  ;;  %3878 = vst [vmem:[#allocation17_spill] sm:$0xff] %v3235_v6  ;;  %v3239_v20 = vpop.eup %2819  ;;  %v753_v40 = vmul.f32 1.8462286, %v3235_v6 }
  0x9f   : > { %3879 = vst [vmem:[#allocation18_spill] sm:$0xff] %v3239_v20 }
  0xa0   : > { %908 = vrot.lane.b32.xlu0 %v751_v38, %s2897_s16  ;;  %v3245_v38 = vpop.eup %2821 }
  0xa1   : > { %3880 = vst [vmem:[#allocation19_spill] sm:$0xff] %v3245_v38  ;;  %v3249_v52 = vpop.eup %2823 }
  0xa2   : > { %v853_v21 = vpop.permute.xlu0 %852  ;;  %972 = vrot.lane.b32.xlu1 %v783_v2, %s2897_s16  ;;  %v785_v2 = vmul.f32 1.8462286, %v3239_v20  ;;  %3881 = vst [vmem:[#allocation20_spill] sm:$0xff] %v3249_v52 }
  0xa3   : > { %2461 = vmatprep.mubr.msk.f32.mxu0 %vm980_vm0, %v853_v21  ;;  %v855_v44 = vpop.permute.xlu1 %854 }
  0xa4   : > { %910 = vrot.lane.b32.xlu0 %v752_v58, %s2897_s16  ;;  %2462 = vmatmul.mubr.msk.f32.vlgmr.msra.gmra.mrb[0].mxu0 %vm980_vm0, %v855_v44  ;;  %v754_v58 = vmul.f32 1.8462286, %v3245_v38  ;;  %v786_v44 = vmul.f32 1.8462286, %v3249_v52  ;;  %v2827_v38 = vld [vmem:[%s2930_s15 + $0x108] sm:$0xff] }
  0xa5   : > { %v628_v54 = vmul.f32 %v2827_v38, %v2960_v4 }
  0xa6   : > { %v917_v25 = vpop.permute.xlu0 %916  ;;  %974 = vrot.lane.b32.xlu1 %v784_v27, %s2897_s16 }
  0xa7   : > { %2509 = vmatprep.mubr.msk.f32.mxu1 %vm980_vm0, %v917_v25  ;;  %v919_v10 = vpop.permute.xlu1 %918 }
  0xa8   : > { %912 = vrot.lane.b32.xlu0 %v753_v40, %s2897_s16  ;;  %2510 = vmatmul.mubr.msk.f32.vlgmr.msra.gmra.mrb[0].mxu1 %vm980_vm0, %v919_v10 }
  0xaa   : > { %v857_v21 = vpop.permute.xlu0 %856  ;;  %976 = vrot.lane.b32.xlu1 %v785_v2, %s2897_s16 }
  0xab   : > { %2464 = vmatprep.mubr.msk.f32.mxu0 %vm980_vm0, %v857_v21  ;;  %v921_v27 = vpop.permute.xlu1 %920 }
  0xac   : > { %914 = vrot.lane.b32.xlu0 %v754_v58, %s2897_s16  ;;  %2512 = vmatprep.mubr.msk.f32.mxu1 %vm980_vm0, %v921_v27 }
  0xae   : > { %v859_v25 = vpop.permute.xlu0 %858  ;;  %978 = vrot.lane.b32.xlu1 %v786_v44, %s2897_s16 }
  0xaf   : > { %2465 = vmatmul.mubr.msk.f32.gmra.mrb[2].mxu0 %vm980_vm0, %v859_v25  ;;  %v923_v10 = vpop.permute.xlu1 %922 }
  0xb0   : > { %2513 = vmatmul.mubr.msk.f32.gmra.mrb[2].mxu1 %vm980_vm0, %v923_v10 }
  0xb2   : > { %v861_v40 = vpop.permute.xlu0 %860 }
  0xb3   : > { %2467 = vmatprep.mubr.msk.f32.mxu0 %vm980_vm0, %v861_v40  ;;  %v925_v2 = vpop.permute.xlu1 %924 }
  0xb4   : > { %2515 = vmatprep.mubr.msk.f32.mxu1 %vm980_vm0, %v925_v2 }
  0xb6   : > { %v863_v21 = vpop.permute.xlu0 %862 }
  0xb7   : > { %2468 = vmatmul.mubr.msk.f32.gmra.mrb[4].mxu0 %vm980_vm0, %v863_v21  ;;  %v927_v58 = vpop.permute.xlu1 %926 }
  0xb8   : > { %2516 = vmatmul.mubr.msk.f32.gmra.mrb[4].mxu1 %vm980_vm0, %v927_v58 }
  0xba   : > { %v865_v27 = vpop.permute.xlu0 %864 }
  0xbb   : > { %2470 = vmatprep.mubr.msk.f32.mxu0 %vm980_vm0, %v865_v27 }
  0xbc   : > { %v929_v44 = vpop.permute.xlu1 %928 }
  0xbd   : > { %2518 = vmatprep.mubr.msk.f32.mxu1 %vm980_vm0, %v929_v44 }
  0xbe   : > { %v867_v25 = vpop.permute.xlu0 %866 }
  0xbf   : > { %2471 = vmatmul.mubr.msk.f32.gmra.mrb[6].mxu0 %vm980_vm0, %v867_v25 }
  0xc0   : > { %v931_v10 = vpop.permute.xlu1 %930 }
  0xc1   : > { %2519 = vmatmul.mubr.msk.f32.gmra.mrb[6].mxu1 %vm980_vm0, %v931_v10 }
  0xc2   : > { %v869_v40 = vpop.permute.xlu0 %868 }
  0xc3   : > { %2473 = vmatprep.mubr.msk.f32.mxu0 %vm980_vm0, %v869_v40 }
  0xc4   : > { %v933_v2 = vpop.permute.xlu1 %932 }
  0xc5   : > { %2521 = vmatprep.mubr.msk.f32.mxu1 %vm980_vm0, %v933_v2 }
  0xc6   : > { %v871_v21 = vpop.permute.xlu0 %870 }
  0xc7   : > { %2474 = vmatmul.mubr.msk.f32.gmra.mrb[8].mxu0 %vm980_vm0, %v871_v21 }
  0xc8   : > { %v935_v58 = vpop.permute.xlu1 %934 }
  0xc9   : > { %2522 = vmatmul.mubr.msk.f32.gmra.mrb[8].mxu1 %vm980_vm0, %v935_v58 }
  0xca   : > { %v873_v27 = vpop.permute.xlu0 %872 }
  0xcb   : > { %2476 = vmatprep.mubr.msk.f32.mxu0 %vm980_vm0, %v873_v27 }
  0xcc   : > { %v937_v44 = vpop.permute.xlu1 %936 }
  0xcd   : > { %2524 = vmatprep.mubr.msk.f32.mxu1 %vm980_vm0, %v937_v44 }
  0xce   : > { %v875_v25 = vpop.permute.xlu0 %874 }
  0xcf   : > { %2477 = vmatmul.mubr.msk.f32.gmra.mrb[10].mxu0 %vm980_vm0, %v875_v25 }
  0xd0   : > { %v939_v10 = vpop.permute.xlu1 %938 }
  0xd1   : > { %2525 = vmatmul.mubr.msk.f32.gmra.mrb[10].mxu1 %vm980_vm0, %v939_v10 }
  0xd2   : > { %v877_v40 = vpop.permute.xlu0 %876 }
  0xd3   : > { %2479 = vmatprep.mubr.msk.f32.mxu0 %vm980_vm0, %v877_v40 }
  0xd4   : > { %v941_v2 = vpop.permute.xlu1 %940 }
  0xd5   : > { %2527 = vmatprep.mubr.msk.f32.mxu1 %vm980_vm0, %v941_v2 }
  0xd6   : > { %v879_v21 = vpop.permute.xlu0 %878 }
  0xd7   : > { %2480 = vmatmul.mubr.msk.f32.gmra.mrb[12].mxu0 %vm980_vm0, %v879_v21 }
  0xd8   : > { %v943_v58 = vpop.permute.xlu1 %942 }
  0xd9   : > { %2528 = vmatmul.mubr.msk.f32.gmra.mrb[12].mxu1 %vm980_vm0, %v943_v58 }
  0xda   : > { %v881_v27 = vpop.permute.xlu0 %880 }
  0xdb   : > { %2482 = vmatprep.mubr.msk.f32.mxu0 %vm980_vm0, %v881_v27 }
  0xdc   : > { %v945_v44 = vpop.permute.xlu1 %944 }
  0xdd   : > { %2530 = vmatprep.mubr.msk.f32.mxu1 %vm980_vm0, %v945_v44 }
  0xde   : > { %v883_v25 = vpop.permute.xlu0 %882 }
  0xdf   : > { %2483 = vmatmul.mubr.msk.f32.gmra.mrb[14].mxu0 %vm980_vm0, %v883_v25 }
  0xe0   : > { %v947_v10 = vpop.permute.xlu1 %946 }
  0xe1   : > { %2531 = vmatmul.mubr.msk.f32.gmra.mrb[14].mxu1 %vm980_vm0, %v947_v10 }
  0xe2   : > { %v885_v40 = vpop.permute.xlu0 %884 }
  0xe3   : > { %2485 = vmatprep.mubr.msk.f32.mxu0 %vm980_vm0, %v885_v40 }
  0xe4   : > { %v949_v2 = vpop.permute.xlu1 %948 }
  0xe5   : > { %2533 = vmatprep.mubr.msk.f32.mxu1 %vm980_vm0, %v949_v2 }
  0xe6   : > { %v887_v21 = vpop.permute.xlu0 %886 }
  0xe7   : > { %2486 = vmatmul.mubr.msk.f32.gmra.mrb[16].mxu0 %vm980_vm0, %v887_v21 }
  0xe8   : > { %v951_v58 = vpop.permute.xlu1 %950 }
  0xe9   : > { %2534 = vmatmul.mubr.msk.f32.gmra.mrb[16].mxu1 %vm980_vm0, %v951_v58 }
  0xea   : > { %v889_v27 = vpop.permute.xlu0 %888 }
  0xeb   : > { %2488 = vmatprep.mubr.msk.f32.mxu0 %vm980_vm0, %v889_v27 }
  0xec   : > { %v953_v44 = vpop.permute.xlu1 %952 }
  0xed   : > { %2536 = vmatprep.mubr.msk.f32.mxu1 %vm980_vm0, %v953_v44 }
  0xee   : > { %v891_v25 = vpop.permute.xlu0 %890 }
  0xef   : > { %2489 = vmatmul.mubr.msk.f32.gmra.mrb[18].mxu0 %vm980_vm0, %v891_v25 }
  0xf0   : > { %v955_v10 = vpop.permute.xlu1 %954 }
  0xf1   : > { %2537 = vmatmul.mubr.msk.f32.gmra.mrb[18].mxu1 %vm980_vm0, %v955_v10 }
  0xf2   : > { %v893_v40 = vpop.permute.xlu0 %892 }
  0xf3   : > { %2491 = vmatprep.mubr.msk.f32.mxu0 %vm980_vm0, %v893_v40 }
  0xf4   : > { %v957_v2 = vpop.permute.xlu1 %956 }
  0xf5   : > { %2539 = vmatprep.mubr.msk.f32.mxu1 %vm980_vm0, %v957_v2 }
  0xf6   : > { %v895_v21 = vpop.permute.xlu0 %894 }
  0xf7   : > { %2492 = vmatmul.mubr.msk.f32.gmra.mrb[20].mxu0 %vm980_vm0, %v895_v21 }
  0xf8   : > { %v959_v58 = vpop.permute.xlu1 %958 }
  0xf9   : > { %2540 = vmatmul.mubr.msk.f32.gmra.mrb[20].mxu1 %vm980_vm0, %v959_v58 }
  0xfa   : > { %v897_v27 = vpop.permute.xlu0 %896 }
  0xfb   : > { %2494 = vmatprep.mubr.msk.f32.mxu0 %vm980_vm0, %v897_v27 }
  0xfc   : > { %v961_v44 = vpop.permute.xlu1 %960 }
  0xfd   : > { %2542 = vmatprep.mubr.msk.f32.mxu1 %vm980_vm0, %v961_v44 }
  0xfe   : > { %v899_v25 = vpop.permute.xlu0 %898 }
  0xff   : > { %2495 = vmatmul.mubr.msk.f32.gmra.mrb[22].mxu0 %vm980_vm0, %v899_v25 }
 0x100   : > { %v963_v10 = vpop.permute.xlu1 %962 }
 0x101   : > { %2543 = vmatmul.mubr.msk.f32.gmra.mrb[22].mxu1 %vm980_vm0, %v963_v10 }
 0x102   : > { %v901_v40 = vpop.permute.xlu0 %900 }
 0x103   : > { %2497 = vmatprep.mubr.msk.f32.mxu0 %vm980_vm0, %v901_v40 }
 0x104   : > { %v965_v2 = vpop.permute.xlu1 %964 }
 0x105   : > { %2545 = vmatprep.mubr.msk.f32.mxu1 %vm980_vm0, %v965_v2 }
 0x106   : > { %v903_v21 = vpop.permute.xlu0 %902 }
 0x107   : > { %2498 = vmatmul.mubr.msk.f32.gmra.mrb[24].mxu0 %vm980_vm0, %v903_v21 }
 0x108   : > { %v967_v58 = vpop.permute.xlu1 %966 }
 0x109   : > { %2546 = vmatmul.mubr.msk.f32.gmra.mrb[24].mxu1 %vm980_vm0, %v967_v58 }
 0x10a   : > { %v905_v27 = vpop.permute.xlu0 %904 }
 0x10b   : > { %2500 = vmatprep.mubr.msk.f32.mxu0 %vm980_vm0, %v905_v27 }
 0x10c   : > { %v969_v44 = vpop.permute.xlu1 %968 }
 0x10d   : > { %2548 = vmatprep.mubr.msk.f32.mxu1 %vm980_vm0, %v969_v44 }
 0x10e   : > { %v907_v25 = vpop.permute.xlu0 %906 }
 0x10f   : > { %2501 = vmatmul.mubr.msk.f32.gmra.mrb[26].mxu0 %vm980_vm0, %v907_v25 }
 0x110   : > { %v971_v10 = vpop.permute.xlu1 %970 }
 0x111   : > { %2549 = vmatmul.mubr.msk.f32.gmra.mrb[26].mxu1 %vm980_vm0, %v971_v10 }
 0x112   : > { %v909_v40 = vpop.permute.xlu0 %908 }
 0x113   : > { %2503 = vmatprep.mubr.msk.f32.mxu0 %vm980_vm0, %v909_v40 }
 0x114   : > { %v973_v2 = vpop.permute.xlu1 %972 }
 0x115   : > { %2551 = vmatprep.mubr.msk.f32.mxu1 %vm980_vm0, %v973_v2 }
 0x116   : > { %v911_v21 = vpop.permute.xlu0 %910 }
 0x117   : > { %2504 = vmatmul.mubr.msk.f32.gmra.mrb[28].mxu0 %vm980_vm0, %v911_v21 }
 0x118   : > { %v975_v58 = vpop.permute.xlu1 %974 }
 0x119   : > { %2552 = vmatmul.mubr.msk.f32.gmra.mrb[28].mxu1 %vm980_vm0, %v975_v58 }
 0x11a   : > { %v913_v27 = vpop.permute.xlu0 %912 }
 0x11b   : > { %2506 = vmatprep.mubr.msk.f32.mxu0 %vm980_vm0, %v913_v27 }
 0x11c   : > { %v977_v44 = vpop.permute.xlu1 %976 }
 0x11d   : > { %2554 = vmatprep.mubr.msk.f32.mxu1 %vm980_vm0, %v977_v44 }
 0x11e   : > { %v915_v25 = vpop.permute.xlu0 %914 }
 0x11f   : > { %2507 = vmatmul.mubr.msk.f32.gmra.mrb[30].mxu0 %vm980_vm0, %v915_v25 }
 0x120   : > { %v979_v10 = vpop.permute.xlu1 %978 }
 0x121   : > { %2555 = vmatmul.mubr.msk.f32.gmra.mrb[30].mxu1 %vm980_vm0, %v979_v10 }
 0x177   : > { %v2463_v40 = vpop.f32.mrb[0].mxu0 }
 0x178   : > { %v1175_v2 = vpop.f32.mrb[1].mxu0  ;;  %1624 = vrot.lane.b32.xlu1 %v2463_v40, %s2898_s19 }
 0x179   : > { %1622 = vrot.lane.b32.xlu0 %v1175_v2, %s2898_s19 }
 0x17b   : > { %v2511_v21 = vpop.f32.mrb[0].mxu1 }
 0x17c   : > { %v1335_v58 = vpop.f32.mrb[1].mxu1  ;;  %1688 = vrot.lane.b32.xlu1 %v2511_v21, %s2898_s19 }
 0x17d   : > { %1686 = vrot.lane.b32.xlu0 %v1335_v58, %s2898_s19 }
 0x182   : > { %v2466_v27 = vpop.f32.mrb[2].mxu0 }
 0x183   : > { %1628 = vrot.lane.b32.xlu1 %v2466_v27, %s2898_s19  ;;  %v1185_v44 = vpop.f32.mrb[3].mxu0  ;;  %v2514_v25 = vpop.f32.mrb[2].mxu1 }
 0x184   : > { %1626 = vrot.lane.b32.xlu0 %v1185_v44, %s2898_s19  ;;  %v1345_v10 = vpop.f32.mrb[3].mxu1 }
 0x187   : > { %1692 = vrot.lane.b32.xlu1 %v2514_v25, %s2898_s19 }
 0x188   : > { %1690 = vrot.lane.b32.xlu0 %v1345_v10, %s2898_s19 }
 0x18a   : > { %v2469_v40 = vpop.f32.mrb[4].mxu0 }
 0x18b   : > { %1632 = vrot.lane.b32.xlu1 %v2469_v40, %s2898_s19  ;;  %v1195_v2 = vpop.f32.mrb[5].mxu0  ;;  %v2517_v20 = vpop.f32.mrb[4].mxu1 }
 0x18c   : > { %1630 = vrot.lane.b32.xlu0 %v1195_v2, %s2898_s19  ;;  %v1355_v21 = vpop.f32.mrb[5].mxu1 }
 0x18f   : > { %1696 = vrot.lane.b32.xlu1 %v2517_v20, %s2898_s19 }
 0x190   : > { %1694 = vrot.lane.b32.xlu0 %v1355_v21, %s2898_s19 }
 0x192   : > { %v2472_v58 = vpop.f32.mrb[6].mxu0 }
 0x193   : > { %1636 = vrot.lane.b32.xlu1 %v2472_v58, %s2898_s19  ;;  %v1205_v27 = vpop.f32.mrb[7].mxu0 }
 0x194   : > { %1634 = vrot.lane.b32.xlu0 %v1205_v27, %s2898_s19  ;;  %v2520_v44 = vpop.f32.mrb[6].mxu1 }
 0x195   : > { %v1365_v25 = vpop.f32.mrb[7].mxu1 }
 0x197   : > { %1700 = vrot.lane.b32.xlu1 %v2520_v44, %s2898_s19 }
 0x198   : > { %1698 = vrot.lane.b32.xlu0 %v1365_v25, %s2898_s19 }
 0x19a   : > { %v2475_v10 = vpop.f32.mrb[8].mxu0 }
 0x19b   : > { %1640 = vrot.lane.b32.xlu1 %v2475_v10, %s2898_s19  ;;  %v1215_v40 = vpop.f32.mrb[9].mxu0 }
 0x19c   : > { %1638 = vrot.lane.b32.xlu0 %v1215_v40, %s2898_s19  ;;  %v2523_v20 = vpop.f32.mrb[8].mxu1 }
 0x19d   : > { %v1375_v2 = vpop.f32.mrb[9].mxu1 }
 0x19f   : > { %1704 = vrot.lane.b32.xlu1 %v2523_v20, %s2898_s19 }
 0x1a0   : > { %1702 = vrot.lane.b32.xlu0 %v1375_v2, %s2898_s19 }
 0x1a2   : > { %v2478_v21 = vpop.f32.mrb[10].mxu0 }
 0x1a3   : > { %1644 = vrot.lane.b32.xlu1 %v2478_v21, %s2898_s19  ;;  %v1225_v58 = vpop.f32.mrb[11].mxu0 }
 0x1a4   : > { %1642 = vrot.lane.b32.xlu0 %v1225_v58, %s2898_s19  ;;  %v2526_v27 = vpop.f32.mrb[10].mxu1 }
 0x1a5   : > { %v1385_v44 = vpop.f32.mrb[11].mxu1 }
 0x1a7   : > { %1708 = vrot.lane.b32.xlu1 %v2526_v27, %s2898_s19 }
 0x1a8   : > { %1706 = vrot.lane.b32.xlu0 %v1385_v44, %s2898_s19 }
 0x1aa   : > { %v2481_v25 = vpop.f32.mrb[12].mxu0 }
 0x1ab   : > { %1648 = vrot.lane.b32.xlu1 %v2481_v25, %s2898_s19  ;;  %v1235_v10 = vpop.f32.mrb[13].mxu0 }
 0x1ac   : > { %1646 = vrot.lane.b32.xlu0 %v1235_v10, %s2898_s19  ;;  %v2529_v40 = vpop.f32.mrb[12].mxu1 }
 0x1ad   : > { %v1395_v20 = vpop.f32.mrb[13].mxu1 }
 0x1af   : > { %1712 = vrot.lane.b32.xlu1 %v2529_v40, %s2898_s19 }
 0x1b0   : > { %1710 = vrot.lane.b32.xlu0 %v1395_v20, %s2898_s19 }
 0x1b2   : > { %v2484_v2 = vpop.f32.mrb[14].mxu0 }
 0x1b3   : > { %1652 = vrot.lane.b32.xlu1 %v2484_v2, %s2898_s19  ;;  %v1245_v21 = vpop.f32.mrb[15].mxu0 }
 0x1b4   : > { %1650 = vrot.lane.b32.xlu0 %v1245_v21, %s2898_s19  ;;  %v2532_v58 = vpop.f32.mrb[14].mxu1 }
 0x1b5   : > { %v1405_v27 = vpop.f32.mrb[15].mxu1 }
 0x1b7   : > { %1716 = vrot.lane.b32.xlu1 %v2532_v58, %s2898_s19 }
 0x1b8   : > { %1714 = vrot.lane.b32.xlu0 %v1405_v27, %s2898_s19 }
 0x1ba   : > { %v2487_v44 = vpop.f32.mrb[16].mxu0 }
 0x1bb   : > { %1656 = vrot.lane.b32.xlu1 %v2487_v44, %s2898_s19  ;;  %v1255_v25 = vpop.f32.mrb[17].mxu0 }
 0x1bc   : > { %1654 = vrot.lane.b32.xlu0 %v1255_v25, %s2898_s19  ;;  %v2535_v10 = vpop.f32.mrb[16].mxu1 }
 0x1bd   : > { %v1415_v40 = vpop.f32.mrb[17].mxu1 }
 0x1bf   : > { %1720 = vrot.lane.b32.xlu1 %v2535_v10, %s2898_s19 }
 0x1c0   : > { %1718 = vrot.lane.b32.xlu0 %v1415_v40, %s2898_s19 }
 0x1c2   : > { %v2490_v20 = vpop.f32.mrb[18].mxu0 }
 0x1c3   : > { %1660 = vrot.lane.b32.xlu1 %v2490_v20, %s2898_s19  ;;  %v1265_v2 = vpop.f32.mrb[19].mxu0 }
 0x1c4   : > { %1658 = vrot.lane.b32.xlu0 %v1265_v2, %s2898_s19  ;;  %v2538_v21 = vpop.f32.mrb[18].mxu1 }
 0x1c5   : > { %v1425_v58 = vpop.f32.mrb[19].mxu1 }
 0x1c7   : > { %1724 = vrot.lane.b32.xlu1 %v2538_v21, %s2898_s19 }
 0x1c8   : > { %1722 = vrot.lane.b32.xlu0 %v1425_v58, %s2898_s19 }
 0x1ca   : > { %v2493_v27 = vpop.f32.mrb[20].mxu0 }
 0x1cb   : > { %1664 = vrot.lane.b32.xlu1 %v2493_v27, %s2898_s19  ;;  %v1275_v44 = vpop.f32.mrb[21].mxu0 }
 0x1cc   : > { %1662 = vrot.lane.b32.xlu0 %v1275_v44, %s2898_s19  ;;  %v2541_v25 = vpop.f32.mrb[20].mxu1 }
 0x1cd   : > { %v1435_v10 = vpop.f32.mrb[21].mxu1 }
 0x1cf   : > { %1728 = vrot.lane.b32.xlu1 %v2541_v25, %s2898_s19 }
 0x1d0   : > { %1726 = vrot.lane.b32.xlu0 %v1435_v10, %s2898_s19 }
 0x1d2   : > { %v2496_v40 = vpop.f32.mrb[22].mxu0 }
 0x1d3   : > { %1668 = vrot.lane.b32.xlu1 %v2496_v40, %s2898_s19  ;;  %v1285_v20 = vpop.f32.mrb[23].mxu0 }
 0x1d4   : > { %1666 = vrot.lane.b32.xlu0 %v1285_v20, %s2898_s19  ;;  %v2544_v2 = vpop.f32.mrb[22].mxu1 }
 0x1d5   : > { %v1445_v21 = vpop.f32.mrb[23].mxu1 }
 0x1d7   : > { %1732 = vrot.lane.b32.xlu1 %v2544_v2, %s2898_s19 }
 0x1d8   : > { %1730 = vrot.lane.b32.xlu0 %v1445_v21, %s2898_s19  ;;  %v2825_v21 = vld [vmem:[%s2930_s15 + $0x8] sm:$0xff] }
 0x1da   : > { %v2499_v58 = vpop.f32.mrb[24].mxu0 }
 0x1db   : > { %1672 = vrot.lane.b32.xlu1 %v2499_v58, %s2898_s19  ;;  %v1295_v27 = vpop.f32.mrb[25].mxu0  ;;  %v596_v58 = vmul.f32 %v2825_v21, %v2952_v60 }
 0x1dc   : > { %1670 = vrot.lane.b32.xlu0 %v1295_v27, %s2898_s19  ;;  %v2547_v44 = vpop.f32.mrb[24].mxu1 }
 0x1dd   : > { %v1455_v25 = vpop.f32.mrb[25].mxu1 }
 0x1df   : > { %1736 = vrot.lane.b32.xlu1 %v2547_v44, %s2898_s19 }
 0x1e0   : > { %1734 = vrot.lane.b32.xlu0 %v1455_v25, %s2898_s19  ;;  %v2826_v25 = vld [vmem:[%s2930_s15] sm:$0xff] }
 0x1e2   : > { %v2502_v10 = vpop.f32.mrb[26].mxu0 }
 0x1e3   : > { %1676 = vrot.lane.b32.xlu1 %v2502_v10, %s2898_s19  ;;  %v1305_v40 = vpop.f32.mrb[27].mxu0  ;;  %v595_v10 = vmul.f32 %v2826_v25, %v2949_v56  ;;  %v2828_v56 = vld [vmem:[%s2930_s15 + $0x100] sm:$0xff] }
 0x1e4   : > { %1674 = vrot.lane.b32.xlu0 %v1305_v40, %s2898_s19  ;;  %v2550_v20 = vpop.f32.mrb[26].mxu1 }
 0x1e5   : > { %v1465_v2 = vpop.f32.mrb[27].mxu1  ;;  %v659_v52 = vmul.f32 1.6765325, %v595_v10 }
 0x1e7   : > { %1740 = vrot.lane.b32.xlu1 %v2550_v20, %s2898_s19  ;;  %1494 = vst.msk [vmem:[%s3382_s22] sm:$0xff] %vm980_vm0, %v659_v52 }
 0x1e8   : > { %1738 = vrot.lane.b32.xlu0 %v1465_v2, %s2898_s19  ;;  %v660_v2 = vmul.f32 1.6765325, %v596_v58 }
 0x1ea   : > { %v2505_v27 = vpop.f32.mrb[28].mxu0  ;;  %v1625_v44 = vpop.permute.xlu1 %1624  ;;  %1495 = vst.msk [vmem:[%s3382_s22 + $0x8] sm:$0xff] %vm980_vm0, %v660_v2  ;;  %v2829_v2 = vld [vmem:[%s2930_s15 + $0x18] sm:$0xff] }
 0x1eb   : > { %1680 = vrot.lane.b32.xlu1 %v2505_v27, %s2898_s19  ;;  %v1315_v40 = vpop.f32.mrb[29].mxu0  ;;  %v1623_v20 = vpop.permute.xlu0 %1622  ;;  %v627_v27 = vmul.f32 %v2828_v56, %v2956_v0  ;;  %v598_v4 = vmul.f32 %v2829_v2, %v2973_v15  ;;  %v2830_v0 = vld [vmem:[%s2930_s15 + $0x10] sm:$0xff] }
 0x1ec   : > { %1678 = vrot.lane.b32.xlu0 %v1315_v40, %s2898_s19  ;;  %v2553_v60 = vpop.f32.mrb[28].mxu1  ;;  %v692_v40 = vmul.f32 1.6765325, %v628_v54  ;;  %v597_v52 = vmul.f32 %v2830_v0, %v2965_v8  ;;  %v2832_v8 = vld [vmem:[%s2930_s15 + $0x110] sm:$0xff]  ;;  %v1814_v45 = vmul.f32 %v2826_v25, %v1623_v20 }
 0x1ed   : > { %v1475_v6 = vpop.f32.mrb[29].mxu1  ;;  %v691_v32 = vmul.f32 1.6765325, %v627_v27 }
 0x1ee   : > { %v1689_v58 = vpop.permute.xlu1 %1688  ;;  %1527 = vst.msk [vmem:[%s3382_s22 + $0x108] sm:$0xff] %vm980_vm0, %v692_v40  ;;  %v661_v27 = vmul.f32 1.6765325, %v597_v52 }
 0x1ef   : > { %1744 = vrot.lane.b32.xlu1 %v2553_v60, %s2898_s19  ;;  %v1687_v10 = vpop.permute.xlu0 %1686  ;;  %1526 = vst.msk [vmem:[%s3382_s22 + $0x100] sm:$0xff] %vm980_vm0, %v691_v32  ;;  %v630_v32 = vmul.f32 %v2831_v11, %v2976_v18  ;;  %v2833_v18 = vld [vmem:[%s2930_s15 + $0x28] sm:$0xff] }
 0x1f0   : > { %1742 = vrot.lane.b32.xlu0 %v1475_v6, %s2898_s19  ;;  %v662_v6 = vmul.f32 1.6765325, %v598_v4  ;;  %1496 = vst.msk [vmem:[%s3382_s22 + $0x10] sm:$0xff] %vm980_vm0, %v661_v27  ;;  %v600_v14 = vmul.f32 %v2833_v18, %v2988_v28  ;;  %v2835_v28 = vld [vmem:[%s2930_s15 + $0x128] sm:$0xff]  ;;  %v1846_v20 = vmul.f32 %v2828_v56, %v1687_v10 }
 0x1f1   : > { %v694_v4 = vmul.f32 1.6765325, %v630_v32  ;;  %v632_v25 = vmul.f32 %v2835_v28, %v2990_v30  ;;  %v2837_v30 = vld [vmem:[%s2930_s15 + $0x38] sm:$0xff] }
 0x1f2   : > { %v2508_v17 = vpop.f32.mrb[30].mxu0  ;;  %1497 = vst.msk [vmem:[%s3382_s22 + $0x18] sm:$0xff] %vm980_vm0, %v662_v6  ;;  %v602_v56 = vmul.f32 %v2837_v30, %v3019_v19  ;;  %v2839_v19 = vld [vmem:[%s2930_s15 + $0x138] sm:$0xff] }
 0x1f3   : > { %1684 = vrot.lane.b32.xlu1 %v2508_v17, %s2898_s19  ;;  %v1325_v54 = vpop.f32.mrb[31].mxu0  ;;  %v629_v17 = vmul.f32 %v2832_v8, %v2970_v12  ;;  %1529 = vst.msk [vmem:[%s3382_s22 + $0x118] sm:$0xff] %vm980_vm0, %v694_v4  ;;  %v2834_v12 = vld [vmem:[%s2930_s15 + $0x20] sm:$0xff] }
 0x1f4   : > { %1682 = vrot.lane.b32.xlu0 %v1325_v54, %s2898_s19  ;;  %v2556_v60 = vpop.f32.mrb[30].mxu1  ;;  %v1815_v54 = vmul.f32 %v2825_v21, %v1625_v44  ;;  %v664_v21 = vmul.f32 1.6765325, %v600_v14 }
 0x1f5   : > { %v1629_v40 = vpop.permute.xlu1 %1628  ;;  %v1485_v15 = vpop.f32.mrb[31].mxu1  ;;  %v693_v52 = vmul.f32 1.6765325, %v629_v17 }
 0x1f6   : > { %v1627_v7 = vpop.permute.xlu0 %1626  ;;  %1499 = vst.msk [vmem:[%s3382_s22 + $0x28] sm:$0xff] %vm980_vm0, %v664_v21 }
 0x1f7   : > { %1748 = vrot.lane.b32.xlu1 %v2556_v60, %s2898_s19  ;;  %1528 = vst.msk [vmem:[%s3382_s22 + $0x110] sm:$0xff] %vm980_vm0, %v693_v52  ;;  %v599_v60 = vmul.f32 %v2834_v12, %v2981_v22  ;;  %v2836_v22 = vld [vmem:[%s2930_s15 + $0x120] sm:$0xff]  ;;  %v1816_v10 = vmul.f32 %v2830_v0, %v1627_v7  ;;  %v634_v7 = vmul.f32 %v2839_v19, %v3024_v24  ;;  %v2841_v24 = vld [vmem:[%s2930_s15 + $0x48] sm:$0xff] }
 0x1f8   : > { %1746 = vrot.lane.b32.xlu0 %v1485_v15, %s2898_s19  ;;  %v1847_v15 = vmul.f32 %v2827_v38, %v1689_v58  ;;  %v631_v14 = vmul.f32 %v2836_v22, %v2986_v26  ;;  %v1817_v58 = vmul.f32 %v2829_v2, %v1629_v40  ;;  %v2838_v26 = vld [vmem:[%s2930_s15 + $0x30] sm:$0xff]  ;;  %v666_v2 = vmul.f32 1.6765325, %v602_v56 }
 0x1f9   : > { %v1693_v6 = vpop.permute.xlu1 %1692  ;;  %v663_v44 = vmul.f32 1.6765325, %v599_v60 }
 0x1fa   : > { %v1691_v27 = vpop.permute.xlu0 %1690  ;;  %v695_v38 = vmul.f32 1.6765325, %v631_v14  ;;  %v1849_v60 = vmul.f32 %v2831_v11, %v1693_v6  ;;  %1501 = vst.msk [vmem:[%s3382_s22 + $0x38] sm:$0xff] %vm980_vm0, %v666_v2  ;;  %v698_v11 = vmul.f32 1.6765325, %v634_v7 }
 0x1fb   : > { %1944 = vrot.lane.b32.xlu1 %v1815_v54, %s2897_s16  ;;  %1498 = vst.msk [vmem:[%s3382_s22 + $0x20] sm:$0xff] %vm980_vm0, %v663_v44  ;;  %v601_v54 = vmul.f32 %v2838_v26, %v2994_v33  ;;  %v1848_v0 = vmul.f32 %v2832_v8, %v1691_v27  ;;  %v2840_v33 = vld [vmem:[%s2930_s15 + $0x130] sm:$0xff]  ;;  %v604_v8 = vmul.f32 %v2841_v24, %v3036_v39  ;;  %v2843_v39 = vld [vmem:[%s2930_s15 + $0x148] sm:$0xff] }
 0x1fc   : > { %1942 = vrot.lane.b32.xlu0 %v1814_v45, %s2897_s16  ;;  %v696_v45 = vmul.f32 1.6765325, %v632_v25  ;;  %1530 = vst.msk [vmem:[%s3382_s22 + $0x120] sm:$0xff] %vm980_vm0, %v695_v38  ;;  %1533 = vst.msk [vmem:[%s3382_s22 + $0x138] sm:$0xff] %vm980_vm0, %v698_v11 }
 0x1fd   : > { %v1633_v32 = vpop.permute.xlu1 %1632  ;;  %v665_v40 = vmul.f32 1.6765325, %v601_v54 }
 0x1fe   : > { %v1631_v17 = vpop.permute.xlu0 %1630  ;;  %1531 = vst.msk [vmem:[%s3382_s22 + $0x128] sm:$0xff] %vm980_vm0, %v696_v45  ;;  %v1819_v25 = vmul.f32 %v2833_v18, %v1633_v32  ;;  %v668_v18 = vmul.f32 1.6765325, %v604_v8 }
 0x1ff   : > { %2008 = vrot.lane.b32.xlu1 %v1847_v15, %s2897_s16  ;;  %1500 = vst.msk [vmem:[%s3382_s22 + $0x30] sm:$0xff] %vm980_vm0, %v665_v40  ;;  %v633_v15 = vmul.f32 %v2840_v33, %v3016_v13  ;;  %v1818_v27 = vmul.f32 %v2834_v12, %v1631_v17  ;;  %v2842_v13 = vld [vmem:[%s2930_s15 + $0x40] sm:$0xff]  ;;  %v636_v12 = vmul.f32 %v2843_v39, %v3041_v43  ;;  %v2845_v43 = vld [vmem:[%s2930_s15 + $0x58] sm:$0xff] }
 0x200   : > { %2006 = vrot.lane.b32.xlu0 %v1846_v20, %s2897_s16  ;;  %v603_v45 = vmul.f32 %v2842_v13, %v3028_v31  ;;  %1503 = vst.msk [vmem:[%s3382_s22 + $0x48] sm:$0xff] %vm980_vm0, %v668_v18  ;;  %v2844_v31 = vld [vmem:[%s2930_s15 + $0x140] sm:$0xff] }
 0x201   : > { %v1697_v4 = vpop.permute.xlu1 %1696  ;;  %v697_v6 = vmul.f32 1.6765325, %v633_v15 }
 0x202   : > { %v1695_v52 = vpop.permute.xlu0 %1694  ;;  %v667_v32 = vmul.f32 1.6765325, %v603_v45  ;;  %v1851_v38 = vmul.f32 %v2835_v28, %v1697_v4  ;;  %v700_v28 = vmul.f32 1.6765325, %v636_v12 }
 0x203   : > { %1948 = vrot.lane.b32.xlu1 %v1817_v58, %s2897_s16  ;;  %1532 = vst.msk [vmem:[%s3382_s22 + $0x130] sm:$0xff] %vm980_vm0, %v697_v6  ;;  %v1850_v17 = vmul.f32 %v2836_v22, %v1695_v52  ;;  %v606_v22 = vmul.f32 %v2845_v43, %v3052_v53  ;;  %v2847_v53 = vld [vmem:[%s2930_s15 + $0x158] sm:$0xff] }
 0x204   : > { %1946 = vrot.lane.b32.xlu0 %v1816_v10, %s2897_s16  ;;  %1502 = vst.msk [vmem:[%s3382_s22 + $0x40] sm:$0xff] %vm980_vm0, %v667_v32  ;;  %v635_v10 = vmul.f32 %v2844_v31, %v3033_v36  ;;  %1535 = vst.msk [vmem:[%s3382_s22 + $0x148] sm:$0xff] %vm980_vm0, %v700_v28  ;;  %v2846_v36 = vld [vmem:[%s2930_s15 + $0x50] sm:$0xff] }
 0x205   : > { %v1637_v21 = vpop.permute.xlu1 %1636 }
 0x206   : > { %v1635_v44 = vpop.permute.xlu0 %1634  ;;  %v699_v4 = vmul.f32 1.6765325, %v635_v10  ;;  %v1821_v54 = vmul.f32 %v2837_v30, %v1637_v21  ;;  %v670_v30 = vmul.f32 1.6765325, %v606_v22 }
 0x207   : > { %2012 = vrot.lane.b32.xlu1 %v1849_v60, %s2897_s16  ;;  %v1820_v52 = vmul.f32 %v2838_v26, %v1635_v44  ;;  %v605_v60 = vmul.f32 %v2846_v36, %v3044_v46  ;;  %v638_v26 = vmul.f32 %v2847_v53, %v3056_v57  ;;  %v2848_v46 = vld [vmem:[%s2930_s15 + $0x150] sm:$0xff]  ;;  %v2849_v57 = vld [vmem:[%s2930_s15 + $0x68] sm:$0xff] }
 0x208   : > { %2010 = vrot.lane.b32.xlu0 %v1848_v0, %s2897_s16  ;;  %1534 = vst.msk [vmem:[%s3382_s22 + $0x140] sm:$0xff] %vm980_vm0, %v699_v4  ;;  %1505 = vst.msk [vmem:[%s3382_s22 + $0x58] sm:$0xff] %vm980_vm0, %v670_v30  ;;  %v637_v11 = vmul.f32 %v2848_v46, %v3049_v50  ;;  %v2850_v50 = vld [vmem:[%s2930_s15 + $0x60] sm:$0xff] }
 0x209   : > { %v1701_v20 = vpop.permute.xlu1 %1700  ;;  %v669_v21 = vmul.f32 1.6765325, %v605_v60 }
 0x20a   : > { %v1699_v14 = vpop.permute.xlu0 %1698  ;;  %v1853_v7 = vmul.f32 %v2839_v19, %v1701_v20  ;;  %v702_v19 = vmul.f32 1.6765325, %v638_v26  ;;  %v701_v6 = vmul.f32 1.6765325, %v637_v11 }
 0x20b   : > { %1952 = vrot.lane.b32.xlu1 %v1819_v25, %s2897_s16  ;;  %v1852_v44 = vmul.f32 %v2840_v33, %v1699_v14  ;;  %1504 = vst.msk [vmem:[%s3382_s22 + $0x50] sm:$0xff] %vm980_vm0, %v669_v21  ;;  %v608_v33 = vmul.f32 %v2849_v57, %v3081_v61  ;;  %v607_v14 = vmul.f32 %v2850_v50, %v3058_v59  ;;  %v2851_v61 = vld [vmem:[%s2930_s15 + $0x168] sm:$0xff]  ;;  %v2852_v59 = vld [vmem:[%s2930_s15 + $0x160] sm:$0xff] }
 0x20c   : > { %1950 = vrot.lane.b32.xlu0 %v1818_v27, %s2897_s16  ;;  %1537 = vst.msk [vmem:[%s3382_s22 + $0x158] sm:$0xff] %vm980_vm0, %v702_v19  ;;  %1536 = vst.msk [vmem:[%s3382_s22 + $0x150] sm:$0xff] %vm980_vm0, %v701_v6  ;;  %v639_v12 = vmul.f32 %v2852_v59, %v3062_v63  ;;  %v2854_v63 = vld [vmem:[%s2930_s15 + $0x70] sm:$0xff] }
 0x20d   : > { %v1641_v58 = vpop.permute.xlu1 %1640  ;;  %v671_v45 = vmul.f32 1.6765325, %v607_v14 }
 0x20e   : > { %v1639_v56 = vpop.permute.xlu0 %1638  ;;  %v1823_v25 = vmul.f32 %v2841_v24, %v1641_v58  ;;  %v672_v24 = vmul.f32 1.6765325, %v608_v33 }
 0x20f   : > { %2016 = vrot.lane.b32.xlu1 %v1851_v38, %s2897_s16  ;;  %v1822_v8 = vmul.f32 %v2842_v13, %v1639_v56  ;;  %v640_v13 = vmul.f32 %v2851_v61, %v3084_v3  ;;  %1506 = vst.msk [vmem:[%s3382_s22 + $0x60] sm:$0xff] %vm980_vm0, %v671_v45  ;;  %v2853_v3 = vld [vmem:[%s2930_s15 + $0x78] sm:$0xff] }
 0x210   : > { %2014 = vrot.lane.b32.xlu0 %v1850_v17, %s2897_s16  ;;  %1507 = vst.msk [vmem:[%s3382_s22 + $0x68] sm:$0xff] %vm980_vm0, %v672_v24  ;;  %v703_v17 = vmul.f32 1.6765325, %v639_v12 }
 0x211   : > { %v1705_v2 = vpop.permute.xlu1 %1704 }
 0x212   : > { %v1703_v40 = vpop.permute.xlu0 %1702  ;;  %v1855_v18 = vmul.f32 %v2843_v39, %v1705_v2  ;;  %v704_v39 = vmul.f32 1.6765325, %v640_v13  ;;  %1538 = vst.msk [vmem:[%s3382_s22 + $0x160] sm:$0xff] %vm980_vm0, %v703_v17 }
 0x213   : > { %1956 = vrot.lane.b32.xlu1 %v1821_v54, %s2897_s16  ;;  %v1854_v38 = vmul.f32 %v2844_v31, %v1703_v40  ;;  %v610_v31 = vmul.f32 %v2853_v3, %v3098_v23  ;;  %v609_v54 = vmul.f32 %v2854_v63, %v3089_v9  ;;  %v2855_v23 = vld [vmem:[%s2930_s15 + $0x178] sm:$0xff]  ;;  %v2856_v9 = vld [vmem:[%s2930_s15 + $0x170] sm:$0xff] }
 0x214   : > { %1954 = vrot.lane.b32.xlu0 %v1820_v52, %s2897_s16  ;;  %1539 = vst.msk [vmem:[%s3382_s22 + $0x168] sm:$0xff] %vm980_vm0, %v704_v39  ;;  %v642_v40 = vmul.f32 %v2855_v23, %v3101_v29  ;;  %v641_v30 = vmul.f32 %v2856_v9, %v3093_v16  ;;  %v2857_v29 = vld [vmem:[%s2930_s15 + $0x88] sm:$0xff]  ;;  %v2858_v16 = vld [vmem:[%s2930_s15 + $0x80] sm:$0xff] }
 0x215   : > { %v1645_v0 = vpop.permute.xlu1 %1644  ;;  %v674_v2 = vmul.f32 1.6765325, %v610_v31  ;;  %v612_v26 = vmul.f32 %v2857_v29, %v3114_v47  ;;  %v2859_v47 = vld [vmem:[%s2930_s15 + $0x188] sm:$0xff] }
 0x216   : > { %v1643_v15 = vpop.permute.xlu0 %1642  ;;  %v1825_v56 = vmul.f32 %v2845_v43, %v1645_v0  ;;  %v673_v43 = vmul.f32 1.6765325, %v609_v54  ;;  %v706_v21 = vmul.f32 1.6765325, %v642_v40  ;;  %v3882_v40 = vld [vmem:[#allocation3_spill] sm:$0xff] }
 0x217   : > { %2020 = vrot.lane.b32.xlu1 %v1853_v7, %s2897_s16  ;;  %v1824_v28 = vmul.f32 %v2846_v36, %v1643_v15  ;;  %1509 = vst.msk [vmem:[%s3382_s22 + $0x78] sm:$0xff] %vm980_vm0, %v674_v2  ;;  %v705_v7 = vmul.f32 1.6765325, %v641_v30  ;;  %v676_v11 = vmul.f32 1.6765325, %v612_v26  ;;  %v3883_v30 = vld [vmem:[#allocation2_spill] sm:$0xff] }
 0x218   : > { %2018 = vrot.lane.b32.xlu0 %v1852_v44, %s2897_s16  ;;  %1508 = vst.msk [vmem:[%s3382_s22 + $0x70] sm:$0xff] %vm980_vm0, %v673_v43  ;;  %1541 = vst.msk [vmem:[%s3382_s22 + $0x178] sm:$0xff] %vm980_vm0, %v706_v21  ;;  %v2869_v26 = vld [vmem:[%s2930_s15 + $0xb8] sm:$0xff] }
 0x219   : > { %v1709_v20 = vpop.permute.xlu1 %1708  ;;  %1540 = vst.msk [vmem:[%s3382_s22 + $0x170] sm:$0xff] %vm980_vm0, %v705_v7  ;;  %1511 = vst.msk [vmem:[%s3382_s22 + $0x88] sm:$0xff] %vm980_vm0, %v676_v11  ;;  %v3884_v11 = vld [vmem:[#allocation4_spill] sm:$0xff] }
 0x21a   : > { %v1707_v27 = vpop.permute.xlu0 %1706  ;;  %v1857_v22 = vmul.f32 %v2847_v53, %v1709_v20  ;;  %v644_v20 = vmul.f32 %v2859_v47, %v3117_v51  ;;  %v2861_v51 = vld [vmem:[%s2930_s15 + $0x98] sm:$0xff] }
 0x21b   : > { %1960 = vrot.lane.b32.xlu1 %v1823_v25, %s2897_s16  ;;  %v1856_v36 = vmul.f32 %v2848_v46, %v1707_v27  ;;  %v611_v46 = vmul.f32 %v2858_v16, %v3106_v37  ;;  %v2860_v37 = vld [vmem:[%s2930_s15 + $0x180] sm:$0xff]  ;;  %v614_v45 = vmul.f32 %v2861_v51, %v3127_v5  ;;  %v2863_v5 = vld [vmem:[%s2930_s15 + $0x198] sm:$0xff] }
 0x21c   : > { %1958 = vrot.lane.b32.xlu0 %v1822_v8, %s2897_s16  ;;  %v643_v8 = vmul.f32 %v2860_v37, %v3109_v41  ;;  %v708_v27 = vmul.f32 1.6765325, %v644_v20  ;;  %v2862_v41 = vld [vmem:[%s2930_s15 + $0x90] sm:$0xff]  ;;  %v646_v12 = vmul.f32 %v2863_v5, %v3146_v34  ;;  %v2865_v34 = vld [vmem:[%s2930_s15 + $0xa8] sm:$0xff] }
 0x21d   : > { %v1649_v32 = vpop.permute.xlu1 %1648  ;;  %v675_v19 = vmul.f32 1.6765325, %v611_v46  ;;  %v678_v13 = vmul.f32 1.6765325, %v614_v45  ;;  %v2870_v46 = vld [vmem:[%s2930_s15 + $0xb0] sm:$0xff] }
 0x21e   : > { %v1647_v58 = vpop.permute.xlu0 %1646  ;;  %v1827_v0 = vmul.f32 %v2849_v57, %v1649_v32  ;;  %1543 = vst.msk [vmem:[%s3382_s22 + $0x188] sm:$0xff] %vm980_vm0, %v708_v27  ;;  %v3885_v27 = vld [vmem:[#allocation5_spill] sm:$0xff] }
 0x21f   : > { %2024 = vrot.lane.b32.xlu1 %v1855_v18, %s2897_s16  ;;  %v1826_v44 = vmul.f32 %v2850_v50, %v1647_v58  ;;  %1510 = vst.msk [vmem:[%s3382_s22 + $0x80] sm:$0xff] %vm980_vm0, %v675_v19  ;;  %v707_v50 = vmul.f32 1.6765325, %v643_v8  ;;  %1513 = vst.msk [vmem:[%s3382_s22 + $0x98] sm:$0xff] %vm980_vm0, %v678_v13  ;;  %v617_v19 = vmul.f32 %v2870_v46, %v3884_v11  ;;  %v2872_v8 = vld [vmem:[%s2930_s15 + $0x1b0] sm:$0xff]  ;;  %v3886_v13 = vld [vmem:[#allocation6_spill] sm:$0xff] }
 0x220   : > { %2022 = vrot.lane.b32.xlu0 %v1854_v38, %s2897_s16  ;;  %v2881_v11 = vld [vmem:[%s2930_s15 + $0xe8] sm:$0xff] }
 0x221   : > { %v1713_v10 = vpop.permute.xlu1 %1712  ;;  %1542 = vst.msk [vmem:[%s3382_s22 + $0x180] sm:$0xff] %vm980_vm0, %v707_v50  ;;  %v649_v50 = vmul.f32 %v2872_v8, %v3885_v27 }
 0x222   : > { %v1711_v4 = vpop.permute.xlu0 %1710  ;;  %v1859_v6 = vmul.f32 %v2851_v61, %v1713_v10  ;;  %v613_v61 = vmul.f32 %v2862_v41, %v3121_v55  ;;  %v2864_v55 = vld [vmem:[%s2930_s15 + $0x190] sm:$0xff]  ;;  %v710_v10 = vmul.f32 1.6765325, %v646_v12 }
 0x223   : > { %1964 = vrot.lane.b32.xlu1 %v1825_v56, %s2897_s16  ;;  %v1858_v57 = vmul.f32 %v2852_v59, %v1711_v4  ;;  %v645_v56 = vmul.f32 %v2864_v55, %v3123_v62  ;;  %v616_v4 = vmul.f32 %v2865_v34, %v3158_v1  ;;  %v2866_v62 = vld [vmem:[%s2930_s15 + $0xa0] sm:$0xff]  ;;  %v2867_v1 = vld [vmem:[%s2930_s15 + $0x1a8] sm:$0xff] }
 0x224   : > { %1962 = vrot.lane.b32.xlu0 %v1824_v28, %s2897_s16  ;;  %v677_v38 = vmul.f32 1.6765325, %v613_v61  ;;  %1545 = vst.msk [vmem:[%s3382_s22 + $0x198] sm:$0xff] %vm980_vm0, %v710_v10  ;;  %v615_v2 = vmul.f32 %v2866_v62, %v3149_v42  ;;  %v2868_v42 = vld [vmem:[%s2930_s15 + $0x1a0] sm:$0xff] }
 0x225   : > { %v1653_v52 = vpop.permute.xlu1 %1652  ;;  %v680_v43 = vmul.f32 1.6765325, %v616_v4  ;;  %v647_v21 = vmul.f32 %v2868_v42, %v3883_v30  ;;  %v2874_v61 = vld [vmem:[%s2930_s15 + $0xc0] sm:$0xff]  ;;  %v3891_v30 = vld [vmem:[#allocation12_spill] sm:$0xff] }
 0x226   : > { %v1651_v60 = vpop.permute.xlu0 %1650  ;;  %v1829_v14 = vmul.f32 %v2853_v3, %v1653_v52  ;;  %1512 = vst.msk [vmem:[%s3382_s22 + $0x90] sm:$0xff] %vm980_vm0, %v677_v38  ;;  %v709_v3 = vmul.f32 1.6765325, %v645_v56  ;;  %v619_v38 = vmul.f32 %v2874_v61, %v3886_v13  ;;  %v2876_v10 = vld [vmem:[%s2930_s15 + $0x1c0] sm:$0xff] }
 0x227   : > { %2028 = vrot.lane.b32.xlu1 %v1857_v22, %s2897_s16  ;;  %v1828_v18 = vmul.f32 %v2854_v63, %v1651_v60  ;;  %v679_v22 = vmul.f32 1.6765325, %v615_v2  ;;  %1515 = vst.msk [vmem:[%s3382_s22 + $0xa8] sm:$0xff] %vm980_vm0, %v680_v43 }
 0x228   : > { %2026 = vrot.lane.b32.xlu0 %v1856_v36, %s2897_s16  ;;  %1544 = vst.msk [vmem:[%s3382_s22 + $0x190] sm:$0xff] %vm980_vm0, %v709_v3  ;;  %v648_v36 = vmul.f32 %v2867_v1, %v3882_v40  ;;  %v3888_v3 = vld [vmem:[#allocation7_spill] sm:$0xff] }
 0x229   : > { %v1717_v53 = vpop.permute.xlu1 %1716  ;;  %1514 = vst.msk [vmem:[%s3382_s22 + $0xa0] sm:$0xff] %vm980_vm0, %v679_v22 }
 0x22a   : > { %v1715_v15 = vpop.permute.xlu0 %1714  ;;  %v1861_v58 = vmul.f32 %v2855_v23, %v1717_v53  ;;  %v712_v7 = vmul.f32 1.6765325, %v648_v36 }
 0x22b   : > { %1968 = vrot.lane.b32.xlu1 %v1827_v0, %s2897_s16  ;;  %v1860_v39 = vmul.f32 %v2856_v9, %v1715_v15  ;;  %v711_v0 = vmul.f32 1.6765325, %v647_v21 }
 0x22c   : > { %1966 = vrot.lane.b32.xlu0 %v1826_v44, %s2897_s16  ;;  %1547 = vst.msk [vmem:[%s3382_s22 + $0x1a8] sm:$0xff] %vm980_vm0, %v712_v7  ;;  %v618_v44 = vmul.f32 %v2869_v26, %v3173_v35  ;;  %v2871_v35 = vld [vmem:[%s2930_s15 + $0x1b8] sm:$0xff] }
 0x22d   : > { %v1657_v25 = vpop.permute.xlu1 %1656  ;;  %1546 = vst.msk [vmem:[%s3382_s22 + $0x1a0] sm:$0xff] %vm980_vm0, %v711_v0 }
 0x22e   : > { %v1655_v33 = vpop.permute.xlu0 %1654  ;;  %v1831_v31 = vmul.f32 %v2857_v29, %v1657_v25  ;;  %v681_v25 = vmul.f32 1.6765325, %v617_v19  ;;  %v3893_v19 = vld [vmem:[#allocation15_spill] sm:$0xff] }
 0x22f   : > { %2032 = vrot.lane.b32.xlu1 %v1859_v6, %s2897_s16  ;;  %v1830_v63 = vmul.f32 %v2858_v16, %v1655_v33  ;;  %v682_v6 = vmul.f32 1.6765325, %v618_v44 }
 0x230   : > { %2030 = vrot.lane.b32.xlu0 %v1858_v57, %s2897_s16  ;;  %v650_v57 = vmul.f32 %v2871_v35, %v3178_v48  ;;  %1516 = vst.msk [vmem:[%s3382_s22 + $0xb0] sm:$0xff] %vm980_vm0, %v681_v25  ;;  %v2873_v48 = vld [vmem:[%s2930_s15 + $0xc8] sm:$0xff] }
 0x231   : > { %v1721_v24 = vpop.permute.xlu1 %1720  ;;  %1517 = vst.msk [vmem:[%s3382_s22 + $0xb8] sm:$0xff] %vm980_vm0, %v682_v6  ;;  %v624_v6 = vmul.f32 %v2881_v11, %v3893_v19 }
 0x232   : > { %v1719_v32 = vpop.permute.xlu0 %1718  ;;  %v1863_v52 = vmul.f32 %v2859_v47, %v1721_v24  ;;  %v713_v24 = vmul.f32 1.6765325, %v649_v50  ;;  %v2883_v50 = vld [vmem:[%s2930_s15 + $0x1e8] sm:$0xff] }
 0x233   : > { %1972 = vrot.lane.b32.xlu1 %v1829_v14, %s2897_s16  ;;  %v1862_v60 = vmul.f32 %v2860_v37, %v1719_v32  ;;  %v714_v14 = vmul.f32 1.6765325, %v650_v57 }
 0x234   : > { %1970 = vrot.lane.b32.xlu0 %v1828_v18, %s2897_s16  ;;  %v620_v18 = vmul.f32 %v2873_v48, %v3187_v49  ;;  %1548 = vst.msk [vmem:[%s3382_s22 + $0x1b0] sm:$0xff] %vm980_vm0, %v713_v24  ;;  %v2875_v49 = vld [vmem:[%s2930_s15 + $0x1c8] sm:$0xff] }
 0x235   : > { %v1661_v59 = vpop.permute.xlu1 %1660  ;;  %1549 = vst.msk [vmem:[%s3382_s22 + $0x1b8] sm:$0xff] %vm980_vm0, %v714_v14  ;;  %v3895_v14 = vld [vmem:[#allocation16_spill] sm:$0xff] }
 0x236   : > { %v1659_v17 = vpop.permute.xlu0 %1658  ;;  %v1833_v53 = vmul.f32 %v2861_v51, %v1661_v59  ;;  %v683_v59 = vmul.f32 1.6765325, %v619_v38  ;;  %v656_v24 = vmul.f32 %v2883_v50, %v3895_v14 }
 0x237   : > { %2036 = vrot.lane.b32.xlu1 %v1861_v58, %s2897_s16  ;;  %v1832_v15 = vmul.f32 %v2862_v41, %v1659_v17  ;;  %v684_v58 = vmul.f32 1.6765325, %v620_v18  ;;  %v3896_v18 = vld [vmem:[#allocation14_spill] sm:$0xff] }
 0x238   : > { %2034 = vrot.lane.b32.xlu0 %v1860_v39, %s2897_s16  ;;  %v3887_v39 = vld [vmem:[#allocation8_spill] sm:$0xff]  ;;  %1518 = vst.msk [vmem:[%s3382_s22 + $0xc0] sm:$0xff] %vm980_vm0, %v683_v59  ;;  %v3897_v59 = vld [vmem:[#allocation19_spill] sm:$0xff] }
 0x239   : > { %v1725_v28 = vpop.permute.xlu1 %1724  ;;  %1519 = vst.msk [vmem:[%s3382_s22 + $0xc8] sm:$0xff] %vm980_vm0, %v684_v58  ;;  %v652_v17 = vmul.f32 %v2875_v49, %v3887_v39  ;;  %v2885_v58 = vld [vmem:[%s2930_s15 + $0xf8] sm:$0xff]  ;;  %v2886_v39 = vld [vmem:[%s2930_s15 + $0xf0] sm:$0xff] }
 0x23a   : > { %v1723_v54 = vpop.permute.xlu0 %1722  ;;  %v1865_v47 = vmul.f32 %v2863_v5, %v1725_v28 }
 0x23b   : > { %1976 = vrot.lane.b32.xlu1 %v1831_v31, %s2897_s16  ;;  %v1864_v33 = vmul.f32 %v2864_v55, %v1723_v54  ;;  %v651_v31 = vmul.f32 %v2876_v10, %v3888_v3  ;;  %v716_v28 = vmul.f32 1.6765325, %v652_v17  ;;  %v2877_v54 = vld [vmem:[%s2930_s15 + $0xd8] sm:$0xff] }
 0x23c   : > { %1974 = vrot.lane.b32.xlu0 %v1830_v63, %s2897_s16  ;;  %v3898_v17 = vld [vmem:[#allocation17_spill] sm:$0xff] }
 0x23d   : > { %v1665_v23 = vpop.permute.xlu1 %1664  ;;  %1551 = vst.msk [vmem:[%s3382_s22 + $0x1c8] sm:$0xff] %vm980_vm0, %v716_v28  ;;  %v2887_v28 = vld [vmem:[%s2930_s15 + $0x1f8] sm:$0xff] }
 0x23e   : > { %v1663_v9 = vpop.permute.xlu0 %1662  ;;  %v1835_v51 = vmul.f32 %v2865_v34, %v1665_v23  ;;  %v715_v34 = vmul.f32 1.6765325, %v651_v31  ;;  %v3890_v23 = vld [vmem:[#allocation9_spill] sm:$0xff] }
 0x23f   : > { %2040 = vrot.lane.b32.xlu1 %v1863_v52, %s2897_s16  ;;  %v1834_v32 = vmul.f32 %v2866_v62, %v1663_v9  ;;  %v3889_v62 = vld [vmem:[#allocation11_spill] sm:$0xff]  ;;  %v2878_v52 = vld [vmem:[%s2930_s15 + $0xd0] sm:$0xff] }
 0x240   : > { %2038 = vrot.lane.b32.xlu0 %v1862_v60, %s2897_s16  ;;  %v622_v2 = vmul.f32 %v2877_v54, %v3889_v62  ;;  %1550 = vst.msk [vmem:[%s3382_s22 + $0x1c0] sm:$0xff] %vm980_vm0, %v715_v34  ;;  %v3899_v34 = vld [vmem:[#allocation20_spill] sm:$0xff] }
 0x241   : > { %v1729_v29 = vpop.permute.xlu1 %1728  ;;  %v2888_v62 = vld [vmem:[%s2930_s15 + $0x1f0] sm:$0xff] }
 0x242   : > { %v1727_v16 = vpop.permute.xlu0 %1726  ;;  %v1867_v5 = vmul.f32 %v2867_v1, %v1729_v29  ;;  %v621_v1 = vmul.f32 %v2878_v52, %v3890_v23  ;;  %v686_v40 = vmul.f32 1.6765325, %v622_v2  ;;  %v3892_v29 = vld [vmem:[#allocation10_spill] sm:$0xff] }
 0x243   : > { %1980 = vrot.lane.b32.xlu1 %v1833_v53, %s2897_s16  ;;  %v1866_v55 = vmul.f32 %v2868_v42, %v1727_v16  ;;  %v2879_v42 = vld [vmem:[%s2930_s15 + $0x1d8] sm:$0xff]  ;;  %v2880_v53 = vld [vmem:[%s2930_s15 + $0x1d0] sm:$0xff]  ;;  %v3900_v2 = vld [vmem:[#allocation18_spill] sm:$0xff] }
 0x244   : > { %1978 = vrot.lane.b32.xlu0 %v1832_v15, %s2897_s16  ;;  %v685_v36 = vmul.f32 1.6765325, %v621_v1  ;;  %1521 = vst.msk [vmem:[%s3382_s22 + $0xd8] sm:$0xff] %vm980_vm0, %v686_v40  ;;  %v654_v21 = vmul.f32 %v2879_v42, %v3891_v30 }
 0x245   : > { %v1669_v20 = vpop.permute.xlu1 %1668 }
 0x246   : > { %v1667_v37 = vpop.permute.xlu0 %1666  ;;  %v1837_v4 = vmul.f32 %v2869_v26, %v1669_v20  ;;  %1520 = vst.msk [vmem:[%s3382_s22 + $0xd0] sm:$0xff] %vm980_vm0, %v685_v36  ;;  %v653_v26 = vmul.f32 %v2880_v53, %v3892_v29  ;;  %v718_v44 = vmul.f32 1.6765325, %v654_v21  ;;  %v2882_v20 = vld [vmem:[%s2930_s15 + $0xe0] sm:$0xff] }
 0x247   : > { %2044 = vrot.lane.b32.xlu1 %v1865_v47, %s2897_s16  ;;  %v1836_v43 = vmul.f32 %v2870_v46, %v1667_v37 }
 0x248   : > { %2042 = vrot.lane.b32.xlu0 %v1864_v33, %s2897_s16  ;;  %v717_v15 = vmul.f32 1.6765325, %v653_v26  ;;  %1553 = vst.msk [vmem:[%s3382_s22 + $0x1d8] sm:$0xff] %vm980_vm0, %v718_v44  ;;  %v688_v33 = vmul.f32 1.6765325, %v624_v6 }
 0x249   : > { %v1733_v45 = vpop.permute.xlu1 %1732 }
 0x24a   : > { %v1731_v41 = vpop.permute.xlu0 %1730  ;;  %v1869_v60 = vmul.f32 %v2871_v35, %v1733_v45  ;;  %1552 = vst.msk [vmem:[%s3382_s22 + $0x1d0] sm:$0xff] %vm980_vm0, %v717_v15  ;;  %v3894_v35 = vld [vmem:[#allocation13_spill] sm:$0xff]  ;;  %1523 = vst.msk [vmem:[%s3382_s22 + $0xe8] sm:$0xff] %vm980_vm0, %v688_v33 }
 0x24b   : > { %1984 = vrot.lane.b32.xlu1 %v1835_v51, %s2897_s16  ;;  %v1868_v7 = vmul.f32 %v2872_v8, %v1731_v41  ;;  %v623_v57 = vmul.f32 %v2882_v20, %v3894_v35  ;;  %v720_v41 = vmul.f32 1.6765325, %v656_v24 }
 0x24c   : > { %1982 = vrot.lane.b32.xlu0 %v1834_v32, %s2897_s16 }
 0x24d   : > { %v1673_v12 = vpop.permute.xlu1 %1672  ;;  %v687_v37 = vmul.f32 1.6765325, %v623_v57  ;;  %1555 = vst.msk [vmem:[%s3382_s22 + $0x1e8] sm:$0xff] %vm980_vm0, %v720_v41 }
 0x24e   : > { %v1671_v56 = vpop.permute.xlu0 %1670  ;;  %v1839_v16 = vmul.f32 %v2873_v48, %v1673_v12  ;;  %v2884_v48 = vld [vmem:[%s2930_s15 + $0x1e0] sm:$0xff] }
 0x24f   : > { %2048 = vrot.lane.b32.xlu1 %v1867_v5, %s2897_s16  ;;  %v1838_v25 = vmul.f32 %v2874_v61, %v1671_v56  ;;  %1522 = vst.msk [vmem:[%s3382_s22 + $0xe0] sm:$0xff] %vm980_vm0, %v687_v37  ;;  %v655_v32 = vmul.f32 %v2884_v48, %v3896_v18  ;;  %v626_v5 = vmul.f32 %v2885_v58, %v3897_v59 }
 0x250   : > { %2046 = vrot.lane.b32.xlu0 %v1866_v55, %s2897_s16  ;;  %v625_v55 = vmul.f32 %v2886_v39, %v3898_v17 }
 0x251   : > { %v1737_v63 = vpop.permute.xlu1 %1736  ;;  %v719_v61 = vmul.f32 1.6765325, %v655_v32  ;;  %v690_v56 = vmul.f32 1.6765325, %v626_v5 }
 0x252   : > { %v1735_v22 = vpop.permute.xlu0 %1734  ;;  %v1871_v8 = vmul.f32 %v2875_v49, %v1737_v63 }
 0x253   : > { %1988 = vrot.lane.b32.xlu1 %v1837_v4, %s2897_s16  ;;  %v1870_v51 = vmul.f32 %v2876_v10, %v1735_v22  ;;  %1554 = vst.msk [vmem:[%s3382_s22 + $0x1e0] sm:$0xff] %vm980_vm0, %v719_v61  ;;  %v689_v10 = vmul.f32 1.6765325, %v625_v55  ;;  %1525 = vst.msk [vmem:[%s3382_s22 + $0xf8] sm:$0xff] %vm980_vm0, %v690_v56  ;;  %v658_v4 = vmul.f32 %v2887_v28, %v3899_v34 }
 0x254   : > { %1986 = vrot.lane.b32.xlu0 %v1836_v43, %s2897_s16  ;;  %v657_v43 = vmul.f32 %v2888_v62, %v3900_v2 }
 0x255   : > { %v1677_v9 = vpop.permute.xlu1 %1676  ;;  %1524 = vst.msk [vmem:[%s3382_s22 + $0xf0] sm:$0xff] %vm980_vm0, %v689_v10  ;;  %v722_v22 = vmul.f32 1.6765325, %v658_v4 }
 0x256   : > { %v1675_v0 = vpop.permute.xlu0 %1674  ;;  %v1841_v13 = vmul.f32 %v2877_v54, %v1677_v9 }
 0x257   : > { %2052 = vrot.lane.b32.xlu1 %v1869_v60, %s2897_s16  ;;  %v1840_v12 = vmul.f32 %v2878_v52, %v1675_v0  ;;  %v721_v52 = vmul.f32 1.6765325, %v657_v43  ;;  %1557 = vst.msk [vmem:[%s3382_s22 + $0x1f8] sm:$0xff] %vm980_vm0, %v722_v22 }
 0x258   : > { %2050 = vrot.lane.b32.xlu0 %v1868_v7, %s2897_s16 }
 0x259   : > { %v1741_v46 = vpop.permute.xlu1 %1740  ;;  %1556 = vst.msk [vmem:[%s3382_s22 + $0x1f0] sm:$0xff] %vm980_vm0, %v721_v52 }
 0x25a   : > { %v1739_v47 = vpop.permute.xlu0 %1738  ;;  %v1873_v3 = vmul.f32 %v2879_v42, %v1741_v46 }
 0x25b   : > { %1992 = vrot.lane.b32.xlu1 %v1839_v16, %s2897_s16  ;;  %v1872_v63 = vmul.f32 %v2880_v53, %v1739_v47 }
 0x25c   : > { %1990 = vrot.lane.b32.xlu0 %v1838_v25, %s2897_s16 }
 0x25d   : > { %v1681_v27 = vpop.permute.xlu1 %1680 }
 0x25e   : > { %v1679_v45 = vpop.permute.xlu0 %1678  ;;  %v1843_v23 = vmul.f32 %v2881_v11, %v1681_v27 }
 0x25f   : > { %2056 = vrot.lane.b32.xlu1 %v1871_v8, %s2897_s16  ;;  %v1842_v40 = vmul.f32 %v2882_v20, %v1679_v45 }
 0x260   : > { %2054 = vrot.lane.b32.xlu0 %v1870_v51, %s2897_s16 }
 0x261   : > { %v1745_v38 = vpop.permute.xlu1 %1744 }
 0x262   : > { %v1743_v49 = vpop.permute.xlu0 %1742  ;;  %v1875_v60 = vmul.f32 %v2883_v50, %v1745_v38 }
 0x263   : > { %1996 = vrot.lane.b32.xlu1 %v1841_v13, %s2897_s16  ;;  %v1874_v42 = vmul.f32 %v2884_v48, %v1743_v49 }
 0x264   : > { %1994 = vrot.lane.b32.xlu0 %v1840_v12, %s2897_s16 }
 0x265   : > { %v1685_v31 = vpop.permute.xlu1 %1684 }
 0x266   : > { %v1683_v54 = vpop.permute.xlu0 %1682  ;;  %v1845_v21 = vmul.f32 %v2885_v58, %v1685_v31 }
 0x267   : > { %2060 = vrot.lane.b32.xlu1 %v1873_v3, %s2897_s16  ;;  %v1844_v0 = vmul.f32 %v2886_v39, %v1683_v54 }
 0x268   : > { %2058 = vrot.lane.b32.xlu0 %v1872_v63, %s2897_s16 }
 0x269   : > { %v1749_v1 = vpop.permute.xlu1 %1748 }
 0x26a   : > { %v1747_v36 = vpop.permute.xlu0 %1746  ;;  %v1877_v29 = vmul.f32 %v2887_v28, %v1749_v1 }
 0x26b   : > { %2000 = vrot.lane.b32.xlu1 %v1843_v23, %s2897_s16  ;;  %v1876_v44 = vmul.f32 %v2888_v62, %v1747_v36 }
 0x26c   : > { %1998 = vrot.lane.b32.xlu0 %v1842_v40, %s2897_s16 }
 0x26d   : > { %v1945_v9 = vpop.permute.xlu1 %1944 }
 0x26e   : > { %2136 = vst.msk [vmem:[%s3382_s22 + $0x8] sm:$0xff] %vm2134_vm1, %v1945_v9  ;;  %v1943_v30 = vpop.permute.xlu0 %1942 }
 0x26f   : > { %2135 = vst.msk [vmem:[%s3382_s22] sm:$0xff] %vm2134_vm1, %v1943_v30  ;;  %2064 = vrot.lane.b32.xlu1 %v1875_v60, %s2897_s16 }
 0x270   : > { %2062 = vrot.lane.b32.xlu0 %v1874_v42, %s2897_s16 }
 0x271   : > { %v2009_v7 = vpop.permute.xlu1 %2008 }
 0x272   : > { %2168 = vst.msk [vmem:[%s3382_s22 + $0x108] sm:$0xff] %vm2134_vm1, %v2009_v7  ;;  %v2007_v53 = vpop.permute.xlu0 %2006 }
 0x273   : > { %2167 = vst.msk [vmem:[%s3382_s22 + $0x100] sm:$0xff] %vm2134_vm1, %v2007_v53  ;;  %2004 = vrot.lane.b32.xlu1 %v1845_v21, %s2897_s16 }
 0x274   : > { %2002 = vrot.lane.b32.xlu0 %v1844_v0, %s2897_s16 }
 0x275   : > { %v1949_v26 = vpop.permute.xlu1 %1948 }
 0x276   : > { %2138 = vst.msk [vmem:[%s3382_s22 + $0x18] sm:$0xff] %vm2134_vm1, %v1949_v26  ;;  %v1947_v15 = vpop.permute.xlu0 %1946 }
 0x277   : > { %2137 = vst.msk [vmem:[%s3382_s22 + $0x10] sm:$0xff] %vm2134_vm1, %v1947_v15  ;;  %2068 = vrot.lane.b32.xlu1 %v1877_v29, %s2897_s16 }
 0x278   : > { %2066 = vrot.lane.b32.xlu0 %v1876_v44, %s2897_s16 }
 0x279   : > { %v2013_v16 = vpop.permute.xlu1 %2012 }
 0x27a   : > { %2170 = vst.msk [vmem:[%s3382_s22 + $0x118] sm:$0xff] %vm2134_vm1, %v2013_v16  ;;  %v2011_v46 = vpop.permute.xlu0 %2010 }
 0x27b   : > { %2169 = vst.msk [vmem:[%s3382_s22 + $0x110] sm:$0xff] %vm2134_vm1, %v2011_v46 }
 0x27d   : > { %v1953_v11 = vpop.permute.xlu1 %1952 }
 0x27e   : > { %2140 = vst.msk [vmem:[%s3382_s22 + $0x28] sm:$0xff] %vm2134_vm1, %v1953_v11  ;;  %v1951_v19 = vpop.permute.xlu0 %1950 }
 0x27f   : > { %2139 = vst.msk [vmem:[%s3382_s22 + $0x20] sm:$0xff] %vm2134_vm1, %v1951_v19 }
 0x281   : > { %v2017_v6 = vpop.permute.xlu1 %2016 }
 0x282   : > { %2172 = vst.msk [vmem:[%s3382_s22 + $0x128] sm:$0xff] %vm2134_vm1, %v2017_v6  ;;  %v2015_v25 = vpop.permute.xlu0 %2014 }
 0x283   : > { %2171 = vst.msk [vmem:[%s3382_s22 + $0x120] sm:$0xff] %vm2134_vm1, %v2015_v25 }
 0x285   : > { %v1957_v47 = vpop.permute.xlu1 %1956 }
 0x286   : > { %2142 = vst.msk [vmem:[%s3382_s22 + $0x38] sm:$0xff] %vm2134_vm1, %v1957_v47  ;;  %v1955_v20 = vpop.permute.xlu0 %1954 }
 0x287   : > { %2141 = vst.msk [vmem:[%s3382_s22 + $0x30] sm:$0xff] %vm2134_vm1, %v1955_v20 }
 0x289   : > { %v2021_v35 = vpop.permute.xlu1 %2020 }
 0x28a   : > { %2174 = vst.msk [vmem:[%s3382_s22 + $0x138] sm:$0xff] %vm2134_vm1, %v2021_v35  ;;  %v2019_v57 = vpop.permute.xlu0 %2018 }
 0x28b   : > { %2173 = vst.msk [vmem:[%s3382_s22 + $0x130] sm:$0xff] %vm2134_vm1, %v2019_v57 }
 0x28d   : > { %v1961_v33 = vpop.permute.xlu1 %1960 }
 0x28e   : > { %2144 = vst.msk [vmem:[%s3382_s22 + $0x48] sm:$0xff] %vm2134_vm1, %v1961_v33  ;;  %v1959_v37 = vpop.permute.xlu0 %1958 }
 0x28f   : > { %2143 = vst.msk [vmem:[%s3382_s22 + $0x40] sm:$0xff] %vm2134_vm1, %v1959_v37 }
 0x291   : > { %v2025_v8 = vpop.permute.xlu1 %2024 }
 0x292   : > { %2176 = vst.msk [vmem:[%s3382_s22 + $0x148] sm:$0xff] %vm2134_vm1, %v2025_v8  ;;  %v2023_v27 = vpop.permute.xlu0 %2022 }
 0x293   : > { %2175 = vst.msk [vmem:[%s3382_s22 + $0x140] sm:$0xff] %vm2134_vm1, %v2023_v27 }
 0x295   : > { %v1965_v50 = vpop.permute.xlu1 %1964 }
 0x296   : > { %2146 = vst.msk [vmem:[%s3382_s22 + $0x58] sm:$0xff] %vm2134_vm1, %v1965_v50  ;;  %v1963_v14 = vpop.permute.xlu0 %1962 }
 0x297   : > { %2145 = vst.msk [vmem:[%s3382_s22 + $0x50] sm:$0xff] %vm2134_vm1, %v1963_v14 }
 0x299   : > { %v2029_v24 = vpop.permute.xlu1 %2028 }
 0x29a   : > { %2178 = vst.msk [vmem:[%s3382_s22 + $0x158] sm:$0xff] %vm2134_vm1, %v2029_v24  ;;  %v2027_v51 = vpop.permute.xlu0 %2026 }
 0x29b   : > { %2177 = vst.msk [vmem:[%s3382_s22 + $0x150] sm:$0xff] %vm2134_vm1, %v2027_v51 }
 0x29d   : > { %v1969_v45 = vpop.permute.xlu1 %1968 }
 0x29e   : > { %2148 = vst.msk [vmem:[%s3382_s22 + $0x68] sm:$0xff] %vm2134_vm1, %v1969_v45  ;;  %v1967_v48 = vpop.permute.xlu0 %1966 }
 0x29f   : > { %2147 = vst.msk [vmem:[%s3382_s22 + $0x60] sm:$0xff] %vm2134_vm1, %v1967_v48 }
 0x2a1   : > { %v2033_v18 = vpop.permute.xlu1 %2032 }
 0x2a2   : > { %2180 = vst.msk [vmem:[%s3382_s22 + $0x168] sm:$0xff] %vm2134_vm1, %v2033_v18  ;;  %v2031_v32 = vpop.permute.xlu0 %2030 }
 0x2a3   : > { %2179 = vst.msk [vmem:[%s3382_s22 + $0x160] sm:$0xff] %vm2134_vm1, %v2031_v32 }
 0x2a5   : > { %v1973_v41 = vpop.permute.xlu1 %1972 }
 0x2a6   : > { %2150 = vst.msk [vmem:[%s3382_s22 + $0x78] sm:$0xff] %vm2134_vm1, %v1973_v41  ;;  %v1971_v61 = vpop.permute.xlu0 %1970 }
 0x2a7   : > { %2149 = vst.msk [vmem:[%s3382_s22 + $0x70] sm:$0xff] %vm2134_vm1, %v1971_v61 }
 0x2a9   : > { %v2037_v13 = vpop.permute.xlu1 %2036 }
 0x2aa   : > { %2182 = vst.msk [vmem:[%s3382_s22 + $0x178] sm:$0xff] %vm2134_vm1, %v2037_v13  ;;  %v2035_v38 = vpop.permute.xlu0 %2034 }
 0x2ab   : > { %2181 = vst.msk [vmem:[%s3382_s22 + $0x170] sm:$0xff] %vm2134_vm1, %v2035_v38 }
 0x2ad   : > { %v1977_v58 = vpop.permute.xlu1 %1976 }
 0x2ae   : > { %2152 = vst.msk [vmem:[%s3382_s22 + $0x88] sm:$0xff] %vm2134_vm1, %v1977_v58  ;;  %v1975_v59 = vpop.permute.xlu0 %1974 }
 0x2af   : > { %2151 = vst.msk [vmem:[%s3382_s22 + $0x80] sm:$0xff] %vm2134_vm1, %v1975_v59 }
 0x2b1   : > { %v2041_v5 = vpop.permute.xlu1 %2040 }
 0x2b2   : > { %2184 = vst.msk [vmem:[%s3382_s22 + $0x188] sm:$0xff] %vm2134_vm1, %v2041_v5  ;;  %v2039_v12 = vpop.permute.xlu0 %2038 }
 0x2b3   : > { %2183 = vst.msk [vmem:[%s3382_s22 + $0x180] sm:$0xff] %vm2134_vm1, %v2039_v12 }
 0x2b5   : > { %v1981_v49 = vpop.permute.xlu1 %1980 }
 0x2b6   : > { %2154 = vst.msk [vmem:[%s3382_s22 + $0x98] sm:$0xff] %vm2134_vm1, %v1981_v49  ;;  %v1979_v39 = vpop.permute.xlu0 %1978 }
 0x2b7   : > { %2153 = vst.msk [vmem:[%s3382_s22 + $0x90] sm:$0xff] %vm2134_vm1, %v1979_v39 }
 0x2b9   : > { %v2045_v17 = vpop.permute.xlu1 %2044 }
 0x2ba   : > { %2186 = vst.msk [vmem:[%s3382_s22 + $0x198] sm:$0xff] %vm2134_vm1, %v2045_v17  ;;  %v2043_v55 = vpop.permute.xlu0 %2042 }
 0x2bb   : > { %2185 = vst.msk [vmem:[%s3382_s22 + $0x190] sm:$0xff] %vm2134_vm1, %v2043_v55 }
 0x2bd   : > { %v1985_v56 = vpop.permute.xlu1 %1984 }
 0x2be   : > { %2156 = vst.msk [vmem:[%s3382_s22 + $0xa8] sm:$0xff] %vm2134_vm1, %v1985_v56  ;;  %v1983_v10 = vpop.permute.xlu0 %1982 }
 0x2bf   : > { %2155 = vst.msk [vmem:[%s3382_s22 + $0xa0] sm:$0xff] %vm2134_vm1, %v1983_v10 }
 0x2c1   : > { %v2049_v3 = vpop.permute.xlu1 %2048 }
 0x2c2   : > { %2188 = vst.msk [vmem:[%s3382_s22 + $0x1a8] sm:$0xff] %vm2134_vm1, %v2049_v3  ;;  %v2047_v31 = vpop.permute.xlu0 %2046 }
 0x2c3   : > { %2187 = vst.msk [vmem:[%s3382_s22 + $0x1a0] sm:$0xff] %vm2134_vm1, %v2047_v31 }
 0x2c5   : > { %v1989_v28 = vpop.permute.xlu1 %1988 }
 0x2c6   : > { %2158 = vst.msk [vmem:[%s3382_s22 + $0xb8] sm:$0xff] %vm2134_vm1, %v1989_v28  ;;  %v1987_v34 = vpop.permute.xlu0 %1986 }
 0x2c7   : > { %2157 = vst.msk [vmem:[%s3382_s22 + $0xb0] sm:$0xff] %vm2134_vm1, %v1987_v34 }
 0x2c9   : > { %v2053_v4 = vpop.permute.xlu1 %2052 }
 0x2ca   : > { %2190 = vst.msk [vmem:[%s3382_s22 + $0x1b8] sm:$0xff] %vm2134_vm1, %v2053_v4  ;;  %v2051_v63 = vpop.permute.xlu0 %2050 }
 0x2cb   : > { %2189 = vst.msk [vmem:[%s3382_s22 + $0x1b0] sm:$0xff] %vm2134_vm1, %v2051_v63 }
 0x2cd   : > { %v1993_v54 = vpop.permute.xlu1 %1992 }
 0x2ce   : > { %2160 = vst.msk [vmem:[%s3382_s22 + $0xc8] sm:$0xff] %vm2134_vm1, %v1993_v54  ;;  %v1991_v62 = vpop.permute.xlu0 %1990 }
 0x2cf   : > { %2159 = vst.msk [vmem:[%s3382_s22 + $0xc0] sm:$0xff] %vm2134_vm1, %v1991_v62 }
 0x2d1   : > { %v2057_v2 = vpop.permute.xlu1 %2056 }
 0x2d2   : > { %2192 = vst.msk [vmem:[%s3382_s22 + $0x1c8] sm:$0xff] %vm2134_vm1, %v2057_v2  ;;  %v2055_v43 = vpop.permute.xlu0 %2054 }
 0x2d3   : > { %2191 = vst.msk [vmem:[%s3382_s22 + $0x1c0] sm:$0xff] %vm2134_vm1, %v2055_v43 }
 0x2d5   : > { %v1997_v22 = vpop.permute.xlu1 %1996 }
 0x2d6   : > { %2162 = vst.msk [vmem:[%s3382_s22 + $0xd8] sm:$0xff] %vm2134_vm1, %v1997_v22  ;;  %v1995_v52 = vpop.permute.xlu0 %1994 }
 0x2d7   : > { %2161 = vst.msk [vmem:[%s3382_s22 + $0xd0] sm:$0xff] %vm2134_vm1, %v1995_v52 }
 0x2d9   : > { %v2061_v23 = vpop.permute.xlu1 %2060 }
 0x2da   : > { %2194 = vst.msk [vmem:[%s3382_s22 + $0x1d8] sm:$0xff] %vm2134_vm1, %v2061_v23  ;;  %v2059_v1 = vpop.permute.xlu0 %2058 }
 0x2db   : > { %2193 = vst.msk [vmem:[%s3382_s22 + $0x1d0] sm:$0xff] %vm2134_vm1, %v2059_v1 }
 0x2dd   : > { %v2001_v40 = vpop.permute.xlu1 %2000 }
 0x2de   : > { %2164 = vst.msk [vmem:[%s3382_s22 + $0xe8] sm:$0xff] %vm2134_vm1, %v2001_v40  ;;  %v1999_v36 = vpop.permute.xlu0 %1998 }
 0x2df   : > { %2163 = vst.msk [vmem:[%s3382_s22 + $0xe0] sm:$0xff] %vm2134_vm1, %v1999_v36 }
 0x2e1   : > { %v2065_v60 = vpop.permute.xlu1 %2064 }
 0x2e2   : > { %2196 = vst.msk [vmem:[%s3382_s22 + $0x1e8] sm:$0xff] %vm2134_vm1, %v2065_v60  ;;  %v2063_v9 = vpop.permute.xlu0 %2062 }
 0x2e3   : > { %2195 = vst.msk [vmem:[%s3382_s22 + $0x1e0] sm:$0xff] %vm2134_vm1, %v2063_v9 }
 0x2e5   : > { %v2005_v42 = vpop.permute.xlu1 %2004 }
 0x2e6   : > { %2166 = vst.msk [vmem:[%s3382_s22 + $0xf8] sm:$0xff] %vm2134_vm1, %v2005_v42  ;;  %v2003_v30 = vpop.permute.xlu0 %2002 }
 0x2e7   : > { %2165 = vst.msk [vmem:[%s3382_s22 + $0xf0] sm:$0xff] %vm2134_vm1, %v2003_v30 }
 0x2e9   : > { %v2069_v21 = vpop.permute.xlu1 %2068 }
 0x2ea   : > { %2198 = vst.msk [vmem:[%s3382_s22 + $0x1f8] sm:$0xff] %vm2134_vm1, %v2069_v21  ;;  %v2067_v7 = vpop.permute.xlu0 %2066 }
 0x2eb   : > { %2197 = vst.msk [vmem:[%s3382_s22 + $0x1f0] sm:$0xff] %vm2134_vm1, %v2067_v7 }
 0x2ec PF: > { %s12_s9 = sadd.s32 1, %s2895_s9  }
 0x2ed   : > { %p9_p4 = scmp.ge.s32.totalorder %s12_s9, 4  }
 0x2ef   :  { %11 = sbr.rel (!%p9_p4) target bundleno = 1 (0x1), region = 58 }

</bundles_post_ra>
